<compile_context>
chip_gen: v7x
topology: tpu7x:2x2x1
jax: 0.10.0
libtpu: 0.0.40
codegen_flags: <defaults>
</compile_context>

<pallas_src>
import numpy as np
import jax
import jax.numpy as jnp
from jax import lax
from jax.experimental import pallas as pl
from jax.experimental.pallas import tpu as pltpu


# ----------------------------------------------------------------------------- #
# hardware helpers (perf only -- safe fallbacks, never affect correctness)
# ----------------------------------------------------------------------------- #
def _vmem_capacity_bytes():
    fn = getattr(pltpu, "get_tpu_info", None)
    if fn is not None:
        try:
            info = fn()
            for name in ("vmem_capacity_bytes", "vmem_size_bytes", "vmem_bytes"):
                v = getattr(info, name, None)
                if isinstance(v, (int, np.integer)) and int(v) > 0:
                    return int(v)
        except Exception:
            pass
    return 64 << 20  # conservative (v7x physical per-TC VMEM)


def _num_tensorcores():
    fn = getattr(pltpu, "get_tpu_info", None)
    if fn is not None:
        try:
            info = fn()
            for name in ("num_tensorcores", "tensorcore_count", "num_cores"):
                v = getattr(info, name, None)
                if isinstance(v, (int, np.integer)) and 0 < int(v) <= 8:
                    return int(v)
        except Exception:
            pass
    try:
        kind = jax.devices()[0].device_kind.lower()
    except Exception:
        return 1
    if "v7" in kind:
        return 2
    if ("v4" in kind) or ("v5p" in kind) or ("v5 p" in kind):
        return 2  # megacore: "parallel" grid axes shard across the 2 TCs
    return 1      # v5e / v6e / unknown: single TensorCore -> one grid step


def _padded_f32_bytes(shape):
    """f32 VMEM footprint of an array after (8,128) tile padding."""
    shape = tuple(int(s) for s in shape)
    if len(shape) < 2:
        return int(np.prod(shape, initial=1)) * 4
    lead = int(np.prod(shape[:-2], initial=1))
    sl = -(-shape[-2] // 8) * 8
    ln = -(-shape[-1] // 128) * 128
    return lead * sl * ln * 4


# ----------------------------------------------------------------------------- #
# kernel
# ----------------------------------------------------------------------------- #
def _make_kernel(THW, n_taps, tap_shifts, tr_plan):
    inv_sz = 1.0 / float(THW)

    def kernel(x_ref, w1t_ref, w2_ref, wma_ref, wmm_ref, wtr_ref, o_ref):
        x = x_ref[...].astype(jnp.float32)                    # (bb, C, THW)
        bb = x.shape[0]

        # -------- Channel attention: avg & max paths through ONE fused FC pass ----
        avg2 = jnp.sum(x, axis=-1, keepdims=True) * inv_sz    # (bb, C, 1)
        mx2 = jnp.max(x, axis=-1, keepdims=True)              # (bb, C, 1)
        v = jnp.concatenate([avg2, mx2], axis=0)              # (2*bb, C, 1), major-dim concat
        w1t = w1t_ref[...]                                     # (C, Ch) == W1.T
        w2 = w2_ref[...]                                       # (C, Ch)
        h = jnp.maximum(
            jnp.sum(w1t[None] * v, axis=1, keepdims=True), 0.0)      # (2*bb, 1, Ch)
        fco = jnp.sum(w2[None] * h, axis=2, keepdims=True)           # (2*bb, C, 1)
        ca = jax.nn.sigmoid(fco[:bb] + fco[bb:])                      # (bb, C, 1)
        x = x * ca                                                    # per-channel scale

        # -------- Spatial attention: 3D conv as lane rolls + host-folded masks ----
        avg_c = jnp.mean(x, axis=1)                            # (bb, THW)
        max_c = jnp.max(x, axis=1)                             # (bb, THW)
        n_acc = min(4, n_taps)
        accs = [None] * n_acc
        for k in range(n_taps):
            s = tap_shifts[k]
            ra = avg_c if s == 0 else pltpu.roll(avg_c, shift=s, axis=1)
            rm = max_c if s == 0 else pltpu.roll(max_c, shift=s, axis=1)
            term = (wma_ref[pl.ds(k, 1), :] * ra +
                    wmm_ref[pl.ds(k, 1), :] * rm)              # (bb, THW)
            j = k % n_acc
            accs[j] = term if accs[j] is None else accs[j] + term
        while len(accs) > 1:                                   # tree-sum partials
            nxt = [accs[i] + accs[i + 1] for i in range(0, len(accs) - 1, 2)]
            if len(accs) % 2:
                nxt.append(accs[-1])
            accs = nxt
        sa = jax.nn.sigmoid(accs[0])[:, None, :]               # (bb, 1, THW)
        x = jnp.maximum(x * sa, 0.0)                           # relu(x * sa)

        # -------- ReduceTempModule: depthwise (3,1,1) stride-3 convs as rolls -----
        # Frames stay packed in the 256-lane dim; each block's taps are lane rolls
        # by multiples of HW with host-folded per-frame (C, THW) coefficients.
        # TODO(synk): groups=False (dense cross-channel temporal conv) not implemented;
        #             this kernel covers the groups=True (depthwise) configuration.
        cur = x                                                # (bb, C, THW)
        for block_terms in tr_plan:
            acc = None
            for (s, ci) in block_terms:
                rolled = cur if s == 0 else pltpu.roll(cur, shift=s, axis=2)
                term = wtr_ref[ci][None] * rolled              # (bb, C, THW)
                acc = term if acc is None else acc + term
            cur = jnp.maximum(acc, 0.0)                        # ReLU inside tr block
        # Final frame lives in lanes [0, HW); the remaining lanes are exact zeros.
        # (relu2 is redundant: cur is already the output of a ReLU.)
        o_ref[...] = cur.astype(o_ref.dtype)

    return kernel


# ----------------------------------------------------------------------------- #
# wrapper
# ----------------------------------------------------------------------------- #
def attention_module_pallas(x, W1, W2, Wsa, Wtr_list):
    N, C, T, H, W = x.shape
    Ch = W1.shape[0]
    HW = H * W
    THW = T * HW
    Kt, Kh, Kw = Wsa.shape[2], Wsa.shape[3], Wsa.shape[4]
    pt, ph, pw = Kt // 2, Kh // 2, Kw // 2
    num_blocks = len(Wtr_list)

    # The module squeezes dim=2; the kernel assumes T reduces to exactly 1.
    t_chk = T
    for _ in range(num_blocks):
        t_chk = (t_chk - 1) // 3 + 1
    assert t_chk == 1, f"ReduceTempModule leaves T={t_chk}; kernel assumes T reduces to 1"
    for Wb in Wtr_list:
        assert Wb.shape[1] == 1, "only depthwise (groups=True) ReduceTempModule supported"

    # ---- channel-attention weights (host-side, static) ----
    w1t = jnp.asarray(W1, jnp.float32).T.reshape(C, Ch)          # (C, Ch) == W1.T
    w2 = jnp.asarray(W2, jnp.float32).reshape(C, Ch)             # (C, Ch)

    # ---- SpatialAttention taps: fold zero-padding masks + conv weights per plane ----
    idx = np.arange(THW)
    t_i, h_i, w_i = idx // HW, (idx // W) % H, idx % W
    wsa_np = np.asarray(Wsa, np.float32)
    n_taps = Kt * Kh * Kw
    wma = np.zeros((n_taps, THW), np.float32)                    # avg-plane weights (dense)
    wmm = np.zeros((n_taps, THW), np.float32)                    # max-plane weights (dense)
    tap_shifts = []
    k = 0
    for dt in range(Kt):
        for dh in range(Kh):
            for dw in range(Kw):
                odt, odh, odw = dt - pt, dh - ph, dw - pw
                off = odt * HW + odh * W + odw
                tap_shifts.append(int((-off) % THW))
                m = ((t_i + odt >= 0) & (t_i + odt < T) &
                     (h_i + odh >= 0) & (h_i + odh < H) &
                     (w_i + odw >= 0) & (w_i + odw < W)).astype(np.float32)
                wma[k] = m * wsa_np[0, 0, dt, dh, dw]
                wmm[k] = m * wsa_np[0, 1, dt, dh, dw]
                k += 1

    # ---- ReduceTempModule: fold weights + frame placement into per-shift coefs ----
    tr_plan = []
    coefs = []
    t_cur = T
    for b in range(num_blocks):
        wb = np.asarray(Wtr_list[b], np.float32)[:, 0, :, 0, 0]  # (C, 3) depthwise taps
        t_out = (t_cur - 1) // 3 + 1
        shift_to_idx = {}
        for ot in range(t_out):
            for dt in range(3):
                t_in = 3 * ot - 1 + dt                           # stride 3, pad 1
                if 0 <= t_in < t_cur:
                    s = int((-(t_in - ot) * HW) % THW)
                    if s not in shift_to_idx:
                        shift_to_idx[s] = len(coefs)
                        coefs.append(np.zeros((C, THW), np.float32))
                    coefs[shift_to_idx[s]][:, ot * HW:(ot + 1) * HW] += wb[:, dt][:, None]
        tr_plan.append(tuple((s, ci) for s, ci in shift_to_idx.items()))
        t_cur = t_out
    tr_plan = tuple(tr_plan)
    if coefs:
        wtr_coef = jnp.asarray(np.stack(coefs, axis=0))          # (n_terms, C, THW)
    else:
        wtr_coef = jnp.zeros((1, C, THW), jnp.float32)           # dummy (unused)

    # ---- core-count / VMEM aware batch block ----
    ncores = _num_tensorcores()
    vmem_cap = _vmem_capacity_bytes()
    vmem_limit = int(min(vmem_cap // 2, 64 << 20))               # safe on v5e/v6e/v7x
    weight_bytes = 2 * (2 * _padded_f32_bytes((C, Ch)) +
                        2 * _padded_f32_bytes((n_taps, THW)) +
                        _padded_f32_bytes(wtr_coef.shape))       # double-buffered
    per_batch_bytes = 12 * C * THW * 4                           # in/out blocks + live f32 temps
    budget = max(vmem_limit - weight_bytes - (2 << 20), per_batch_bytes)
    bb = max(1, min(N, -(-N // ncores), budget // per_batch_bytes))
    while N % bb:                                                # bb must divide N
        bb -= 1

    x_flat = x.reshape(N, C, THW)                                # lane-dense input (256 lanes)
    kernel = _make_kernel(THW, n_taps, tuple(tap_shifts), tr_plan)

    grid_spec = pltpu.PrefetchScalarGridSpec(
        num_scalar_prefetch=0,
        grid=(N // bb,),
        in_specs=[
            pl.BlockSpec((bb, C, THW), lambda n: (n, 0, 0)),                 # x
            pl.BlockSpec((C, Ch), lambda n: (0, 0)),                         # W1.T
            pl.BlockSpec((C, Ch), lambda n: (0, 0)),                         # W2
            pl.BlockSpec((n_taps, THW), lambda n: (0, 0)),                   # SA avg-plane taps
            pl.BlockSpec((n_taps, THW), lambda n: (0, 0)),                   # SA max-plane taps
            pl.BlockSpec(wtr_coef.shape, lambda n: (0, 0, 0)),               # temporal coefs
        ],
        out_specs=pl.BlockSpec((bb, C, THW), lambda n: (n, 0, 0)),
    )
    out = pl.pallas_call(
        kernel,
        out_shape=jax.ShapeDtypeStruct((N, C, THW), x.dtype),
        grid_spec=grid_spec,
        compiler_params=pltpu.CompilerParams(
            dimension_semantics=("parallel",),
            vmem_limit_bytes=vmem_limit),
    )(x_flat, w1t, w2, jnp.asarray(wma), jnp.asarray(wmm), wtr_coef)
    # surviving frame is in the first HW lanes; lanes beyond are exact zeros.
    return out[:, :, :HW].reshape(N, C, H, W)


# ----------------------------------------------------------------------------- #
# pure-JAX reference (mirrors the PyTorch forward, NCDHW)
# ----------------------------------------------------------------------------- #
def reference_forward(x, W1, W2, Wsa, Wtr_list):
    # ChannelAttention
    avg_p = jnp.mean(x, axis=(2, 3, 4), keepdims=True)
    max_p = jnp.max(x, axis=(2, 3, 4), keepdims=True)

    def fc(v):
        h = jnp.einsum('jc,ncdhw->njdhw', W1, v, precision=lax.Precision.HIGHEST)
        h = jax.nn.relu(h)
        return jnp.einsum('cj,njdhw->ncdhw', W2, h, precision=lax.Precision.HIGHEST)

    ca = jax.nn.sigmoid(fc(avg_p) + fc(max_p))
    x = ca * x

    # SpatialAttention
    avg_c = jnp.mean(x, axis=1, keepdims=True)
    max_c = jnp.max(x, axis=1, keepdims=True)
    cat = jnp.concatenate([avg_c, max_c], axis=1)
    Kt, Kh, Kw = Wsa.shape[2:]
    sa = lax.conv_general_dilated(
        cat, Wsa, window_strides=(1, 1, 1),
        padding=((Kt // 2, Kt // 2), (Kh // 2, Kh // 2), (Kw // 2, Kw // 2)),
        dimension_numbers=('NCDHW', 'OIDHW', 'NCDHW'),
        precision=lax.Precision.HIGHEST)
    sa = jax.nn.sigmoid(sa)
    x = jax.nn.relu(x * sa)

    # ReduceTempModule (depthwise)
    C = x.shape[1]
    for Wb in Wtr_list:
        x = lax.conv_general_dilated(
            x, Wb, window_strides=(3, 1, 1),
            padding=((1, 1), (0, 0), (0, 0)),
            dimension_numbers=('NCDHW', 'OIDHW', 'NCDHW'),
            feature_group_count=C,
            precision=lax.Precision.HIGHEST)
        x = jax.nn.relu(x)
    x = x[:, :, 0]           # squeeze(dim=2), T == 1
    return jax.nn.relu(x)    # relu2


if __name__ == "__main__":
    # AttentionModule_test2(temp_att=True, chan_att=True, in_channels=16,
    #                       timepoints=4, att_kernel=3, groups=True)
    N, C, T, H, W = 2, 16, 4, 8, 8
    att_kernel = 3
    Kt = T // 2 + 1          # SpatialAttention time_dim = 3
    num_blocks = T // 2      # ReduceTempModule blocks = 2
    Ch = C // 16             # ChannelAttention hidden = 1

    key = jax.random.PRNGKey(0)
    ks = jax.random.split(key, 4 + num_blocks)
    x = jax.random.normal(ks[0], (N, C, T, H, W), jnp.float32)
    W1 = jax.random.normal(ks[1], (Ch, C), jnp.float32) * 0.3        # fc conv1 (1x1x1)
    W2 = jax.random.normal(ks[2], (C, Ch), jnp.float32) * 0.3        # fc conv2 (1x1x1)
    Wsa = jax.random.normal(ks[3], (1, 2, Kt, att_kernel, att_kernel),
                            jnp.float32) * 0.2                       # SA conv weight
    Wtr_list = [jax.random.normal(ks[4 + b], (C, 1, 3, 1, 1), jnp.float32) * 0.5
                for b in range(num_blocks)]                          # depthwise weights

    out = attention_module_pallas(x, W1, W2, Wsa, Wtr_list)
    out = jax.block_until_ready(out)

    ref = reference_forward(x, W1, W2, Wsa, Wtr_list)
    np.testing.assert_allclose(np.asarray(out), np.asarray(ref),
                               rtol=1e-4, atol=1e-4)
    print("KERNEL_OK")
</pallas_src>

<mosaic_0001>
module attributes {stable_mosaic.version = 11 : i64} {
  func.func @kernel(%arg0: i32, %arg1: memref<2x16x256xf32, #tpu.memory_space<vmem>>, %arg2: memref<16x1xf32, #tpu.memory_space<vmem>>, %arg3: memref<16x1xf32, #tpu.memory_space<vmem>>, %arg4: memref<27x256xf32, #tpu.memory_space<vmem>>, %arg5: memref<27x256xf32, #tpu.memory_space<vmem>>, %arg6: memref<5x16x256xf32, #tpu.memory_space<vmem>>, %arg7: memref<2x16x256xf32, #tpu.memory_space<vmem>>) attributes {dimension_semantics = [#tpu.dimension_semantics<parallel>], iteration_bounds = array<i64: 1>, scalar_prefetch = 0 : i64, scratch_operands = 0 : i64, tpu.core_type = #tpu.core_type<tc>, window_params = [{transform_indices = @transform_0, window_bounds = array<i64: 2, 16, 256>}, {pipeline_mode = #tpu.pipeline_mode<synchronous>, transform_indices = @transform_1, window_bounds = array<i64: 16, 1>}, {pipeline_mode = #tpu.pipeline_mode<synchronous>, transform_indices = @transform_2, window_bounds = array<i64: 16, 1>}, {pipeline_mode = #tpu.pipeline_mode<synchronous>, transform_indices = @transform_3, window_bounds = array<i64: 27, 256>}, {pipeline_mode = #tpu.pipeline_mode<synchronous>, transform_indices = @transform_4, window_bounds = array<i64: 27, 256>}, {pipeline_mode = #tpu.pipeline_mode<synchronous>, transform_indices = @transform_5, window_bounds = array<i64: 5, 16, 256>}, {transform_indices = @transform_6, window_bounds = array<i64: 2, 16, 256>}]} {
    %c0 = arith.constant 0 : index
    %c0_0 = arith.constant 0 : index
    %c0_1 = arith.constant 0 : index
    %0 = vector.load %arg1[%c0, %c0_0, %c0_1] : memref<2x16x256xf32, #tpu.memory_space<vmem>>, vector<2x16x256xf32>
    %cst = arith.constant dense<0.000000e+00> : vector<2x16xf32>
    %1 = vector.multi_reduction <add>, %0, %cst [2] : vector<2x16x256xf32> to vector<2x16xf32>
    %2 = vector.shape_cast %1 : vector<2x16xf32> to vector<2x16x1xf32>
    %cst_2 = arith.constant 3.906250e-03 : f32
    %3 = vector.broadcast %cst_2 : f32 to vector<2x16x1xf32>
    %4 = arith.mulf %2, %3 : vector<2x16x1xf32>
    %cst_3 = arith.constant dense<0xFF800000> : vector<2x16xf32>
    %5 = vector.multi_reduction <maximumf>, %0, %cst_3 [2] : vector<2x16x256xf32> to vector<2x16xf32>
    %6 = vector.shape_cast %5 : vector<2x16xf32> to vector<2x16x1xf32>
    %7 = tpu.concatenate %4, %6 in 0 : vector<2x16x1xf32>, vector<2x16x1xf32> -> vector<4x16x1xf32>
    %c0_4 = arith.constant 0 : index
    %c0_5 = arith.constant 0 : index
    %8 = vector.load %arg2[%c0_4, %c0_5] : memref<16x1xf32, #tpu.memory_space<vmem>>, vector<16x1xf32>
    %c0_6 = arith.constant 0 : index
    %c0_7 = arith.constant 0 : index
    %9 = vector.load %arg3[%c0_6, %c0_7] : memref<16x1xf32, #tpu.memory_space<vmem>>, vector<16x1xf32>
    %10 = vector.shape_cast %8 : vector<16x1xf32> to vector<1x16x1xf32>
    %11 = vector.broadcast %10 : vector<1x16x1xf32> to vector<4x16x1xf32>
    %12 = arith.mulf %11, %7 : vector<4x16x1xf32>
    %cst_8 = arith.constant dense<0.000000e+00> : vector<4x1xf32>
    %13 = vector.multi_reduction <add>, %12, %cst_8 [1] : vector<4x16x1xf32> to vector<4x1xf32>
    %14 = vector.shape_cast %13 : vector<4x1xf32> to vector<4x1x1xf32>
    %cst_9 = arith.constant 0.000000e+00 : f32
    %15 = vector.broadcast %cst_9 : f32 to vector<4x1x1xf32>
    %16 = arith.maximumf %14, %15 : vector<4x1x1xf32>
    %17 = vector.shape_cast %9 : vector<16x1xf32> to vector<1x16x1xf32>
    %18 = vector.broadcast %17 : vector<1x16x1xf32> to vector<4x16x1xf32>
    %19 = vector.broadcast %16 : vector<4x1x1xf32> to vector<4x16x1xf32>
    %20 = arith.mulf %18, %19 : vector<4x16x1xf32>
    %cst_10 = arith.constant dense<0.000000e+00> : vector<4x16xf32>
    %21 = vector.multi_reduction <add>, %20, %cst_10 [2] : vector<4x16x1xf32> to vector<4x16xf32>
    %22 = vector.shape_cast %21 : vector<4x16xf32> to vector<4x16x1xf32>
    %23 = vector.extract_strided_slice %22 {offsets = [0, 0, 0], sizes = [2, 16, 1], strides = [1, 1, 1]} : vector<4x16x1xf32> to vector<2x16x1xf32>
    %24 = vector.extract_strided_slice %22 {offsets = [2, 0, 0], sizes = [2, 16, 1], strides = [1, 1, 1]} : vector<4x16x1xf32> to vector<2x16x1xf32>
    %25 = arith.addf %23, %24 : vector<2x16x1xf32>
    %26 = arith.negf %25 : vector<2x16x1xf32>
    %27 = math.exp %26 : vector<2x16x1xf32>
    %cst_11 = arith.constant 1.000000e+00 : f32
    %28 = vector.broadcast %cst_11 : f32 to vector<2x16x1xf32>
    %29 = arith.addf %28, %27 : vector<2x16x1xf32>
    %30 = arith.divf %28, %29 : vector<2x16x1xf32>
    %31 = vector.broadcast %30 : vector<2x16x1xf32> to vector<2x16x256xf32>
    %32 = arith.mulf %0, %31 : vector<2x16x256xf32>
    %cst_12 = arith.constant dense<0.000000e+00> : vector<2x256xf32>
    %33 = vector.multi_reduction <add>, %32, %cst_12 [1] : vector<2x16x256xf32> to vector<2x256xf32>
    %cst_13 = arith.constant 1.600000e+01 : f32
    %34 = vector.broadcast %cst_13 : f32 to vector<2x256xf32>
    %35 = arith.divf %33, %34 : vector<2x256xf32>
    %cst_14 = arith.constant dense<0xFF800000> : vector<2x256xf32>
    %36 = vector.multi_reduction <maximumf>, %32, %cst_14 [1] : vector<2x16x256xf32> to vector<2x256xf32>
    %c73_i32 = arith.constant 73 : i32
    %37 = tpu.dynamic_rotate %35 by %c73_i32 dim 1 : vector<2x256xf32>, i32 -> vector<2x256xf32>
    %c73_i32_15 = arith.constant 73 : i32
    %38 = tpu.dynamic_rotate %36 by %c73_i32_15 dim 1 : vector<2x256xf32>, i32 -> vector<2x256xf32>
    %c0_16 = arith.constant 0 : index
    %c0_17 = arith.constant 0 : index
    %39 = vector.load %arg4[%c0_16, %c0_17] : memref<27x256xf32, #tpu.memory_space<vmem>>, vector<1x256xf32>
    %40 = vector.broadcast %39 : vector<1x256xf32> to vector<2x256xf32>
    %41 = arith.mulf %40, %37 : vector<2x256xf32>
    %c0_18 = arith.constant 0 : index
    %c0_19 = arith.constant 0 : index
    %42 = vector.load %arg5[%c0_18, %c0_19] : memref<27x256xf32, #tpu.memory_space<vmem>>, vector<1x256xf32>
    %43 = vector.broadcast %42 : vector<1x256xf32> to vector<2x256xf32>
    %44 = arith.mulf %43, %38 : vector<2x256xf32>
    %45 = arith.addf %41, %44 : vector<2x256xf32>
    %c72_i32 = arith.constant 72 : i32
    %46 = tpu.dynamic_rotate %35 by %c72_i32 dim 1 : vector<2x256xf32>, i32 -> vector<2x256xf32>
    %c72_i32_20 = arith.constant 72 : i32
    %47 = tpu.dynamic_rotate %36 by %c72_i32_20 dim 1 : vector<2x256xf32>, i32 -> vector<2x256xf32>
    %c1 = arith.constant 1 : index
    %c0_21 = arith.constant 0 : index
    %48 = vector.load %arg4[%c1, %c0_21] : memref<27x256xf32, #tpu.memory_space<vmem>>, vector<1x256xf32>
    %49 = vector.broadcast %48 : vector<1x256xf32> to vector<2x256xf32>
    %50 = arith.mulf %49, %46 : vector<2x256xf32>
    %c1_22 = arith.constant 1 : index
    %c0_23 = arith.constant 0 : index
    %51 = vector.load %arg5[%c1_22, %c0_23] : memref<27x256xf32, #tpu.memory_space<vmem>>, vector<1x256xf32>
    %52 = vector.broadcast %51 : vector<1x256xf32> to vector<2x256xf32>
    %53 = arith.mulf %52, %47 : vector<2x256xf32>
    %54 = arith.addf %50, %53 : vector<2x256xf32>
    %c71_i32 = arith.constant 71 : i32
    %55 = tpu.dynamic_rotate %35 by %c71_i32 dim 1 : vector<2x256xf32>, i32 -> vector<2x256xf32>
    %c71_i32_24 = arith.constant 71 : i32
    %56 = tpu.dynamic_rotate %36 by %c71_i32_24 dim 1 : vector<2x256xf32>, i32 -> vector<2x256xf32>
    %c2 = arith.constant 2 : index
    %c0_25 = arith.constant 0 : index
    %57 = vector.load %arg4[%c2, %c0_25] : memref<27x256xf32, #tpu.memory_space<vmem>>, vector<1x256xf32>
    %58 = vector.broadcast %57 : vector<1x256xf32> to vector<2x256xf32>
    %59 = arith.mulf %58, %55 : vector<2x256xf32>
    %c2_26 = arith.constant 2 : index
    %c0_27 = arith.constant 0 : index
    %60 = vector.load %arg5[%c2_26, %c0_27] : memref<27x256xf32, #tpu.memory_space<vmem>>, vector<1x256xf32>
    %61 = vector.broadcast %60 : vector<1x256xf32> to vector<2x256xf32>
    %62 = arith.mulf %61, %56 : vector<2x256xf32>
    %63 = arith.addf %59, %62 : vector<2x256xf32>
    %c65_i32 = arith.constant 65 : i32
    %64 = tpu.dynamic_rotate %35 by %c65_i32 dim 1 : vector<2x256xf32>, i32 -> vector<2x256xf32>
    %c65_i32_28 = arith.constant 65 : i32
    %65 = tpu.dynamic_rotate %36 by %c65_i32_28 dim 1 : vector<2x256xf32>, i32 -> vector<2x256xf32>
    %c3 = arith.constant 3 : index
    %c0_29 = arith.constant 0 : index
    %66 = vector.load %arg4[%c3, %c0_29] : memref<27x256xf32, #tpu.memory_space<vmem>>, vector<1x256xf32>
    %67 = vector.broadcast %66 : vector<1x256xf32> to vector<2x256xf32>
    %68 = arith.mulf %67, %64 : vector<2x256xf32>
    %c3_30 = arith.constant 3 : index
    %c0_31 = arith.constant 0 : index
    %69 = vector.load %arg5[%c3_30, %c0_31] : memref<27x256xf32, #tpu.memory_space<vmem>>, vector<1x256xf32>
    %70 = vector.broadcast %69 : vector<1x256xf32> to vector<2x256xf32>
    %71 = arith.mulf %70, %65 : vector<2x256xf32>
    %72 = arith.addf %68, %71 : vector<2x256xf32>
    %c64_i32 = arith.constant 64 : i32
    %73 = tpu.dynamic_rotate %35 by %c64_i32 dim 1 : vector<2x256xf32>, i32 -> vector<2x256xf32>
    %c64_i32_32 = arith.constant 64 : i32
    %74 = tpu.dynamic_rotate %36 by %c64_i32_32 dim 1 : vector<2x256xf32>, i32 -> vector<2x256xf32>
    %c4 = arith.constant 4 : index
    %c0_33 = arith.constant 0 : index
    %75 = vector.load %arg4[%c4, %c0_33] : memref<27x256xf32, #tpu.memory_space<vmem>>, vector<1x256xf32>
    %76 = vector.broadcast %75 : vector<1x256xf32> to vector<2x256xf32>
    %77 = arith.mulf %76, %73 : vector<2x256xf32>
    %c4_34 = arith.constant 4 : index
    %c0_35 = arith.constant 0 : index
    %78 = vector.load %arg5[%c4_34, %c0_35] : memref<27x256xf32, #tpu.memory_space<vmem>>, vector<1x256xf32>
    %79 = vector.broadcast %78 : vector<1x256xf32> to vector<2x256xf32>
    %80 = arith.mulf %79, %74 : vector<2x256xf32>
    %81 = arith.addf %77, %80 : vector<2x256xf32>
    %82 = arith.addf %45, %81 : vector<2x256xf32>
    %c63_i32 = arith.constant 63 : i32
    %83 = tpu.dynamic_rotate %35 by %c63_i32 dim 1 : vector<2x256xf32>, i32 -> vector<2x256xf32>
    %c63_i32_36 = arith.constant 63 : i32
    %84 = tpu.dynamic_rotate %36 by %c63_i32_36 dim 1 : vector<2x256xf32>, i32 -> vector<2x256xf32>
    %c5 = arith.constant 5 : index
    %c0_37 = arith.constant 0 : index
    %85 = vector.load %arg4[%c5, %c0_37] : memref<27x256xf32, #tpu.memory_space<vmem>>, vector<1x256xf32>
    %86 = vector.broadcast %85 : vector<1x256xf32> to vector<2x256xf32>
    %87 = arith.mulf %86, %83 : vector<2x256xf32>
    %c5_38 = arith.constant 5 : index
    %c0_39 = arith.constant 0 : index
    %88 = vector.load %arg5[%c5_38, %c0_39] : memref<27x256xf32, #tpu.memory_space<vmem>>, vector<1x256xf32>
    %89 = vector.broadcast %88 : vector<1x256xf32> to vector<2x256xf32>
    %90 = arith.mulf %89, %84 : vector<2x256xf32>
    %91 = arith.addf %87, %90 : vector<2x256xf32>
    %92 = arith.addf %54, %91 : vector<2x256xf32>
    %c57_i32 = arith.constant 57 : i32
    %93 = tpu.dynamic_rotate %35 by %c57_i32 dim 1 : vector<2x256xf32>, i32 -> vector<2x256xf32>
    %c57_i32_40 = arith.constant 57 : i32
    %94 = tpu.dynamic_rotate %36 by %c57_i32_40 dim 1 : vector<2x256xf32>, i32 -> vector<2x256xf32>
    %c6 = arith.constant 6 : index
    %c0_41 = arith.constant 0 : index
    %95 = vector.load %arg4[%c6, %c0_41] : memref<27x256xf32, #tpu.memory_space<vmem>>, vector<1x256xf32>
    %96 = vector.broadcast %95 : vector<1x256xf32> to vector<2x256xf32>
    %97 = arith.mulf %96, %93 : vector<2x256xf32>
    %c6_42 = arith.constant 6 : index
    %c0_43 = arith.constant 0 : index
    %98 = vector.load %arg5[%c6_42, %c0_43] : memref<27x256xf32, #tpu.memory_space<vmem>>, vector<1x256xf32>
    %99 = vector.broadcast %98 : vector<1x256xf32> to vector<2x256xf32>
    %100 = arith.mulf %99, %94 : vector<2x256xf32>
    %101 = arith.addf %97, %100 : vector<2x256xf32>
    %102 = arith.addf %63, %101 : vector<2x256xf32>
    %c56_i32 = arith.constant 56 : i32
    %103 = tpu.dynamic_rotate %35 by %c56_i32 dim 1 : vector<2x256xf32>, i32 -> vector<2x256xf32>
    %c56_i32_44 = arith.constant 56 : i32
    %104 = tpu.dynamic_rotate %36 by %c56_i32_44 dim 1 : vector<2x256xf32>, i32 -> vector<2x256xf32>
    %c7 = arith.constant 7 : index
    %c0_45 = arith.constant 0 : index
    %105 = vector.load %arg4[%c7, %c0_45] : memref<27x256xf32, #tpu.memory_space<vmem>>, vector<1x256xf32>
    %106 = vector.broadcast %105 : vector<1x256xf32> to vector<2x256xf32>
    %107 = arith.mulf %106, %103 : vector<2x256xf32>
    %c7_46 = arith.constant 7 : index
    %c0_47 = arith.constant 0 : index
    %108 = vector.load %arg5[%c7_46, %c0_47] : memref<27x256xf32, #tpu.memory_space<vmem>>, vector<1x256xf32>
    %109 = vector.broadcast %108 : vector<1x256xf32> to vector<2x256xf32>
    %110 = arith.mulf %109, %104 : vector<2x256xf32>
    %111 = arith.addf %107, %110 : vector<2x256xf32>
    %112 = arith.addf %72, %111 : vector<2x256xf32>
    %c55_i32 = arith.constant 55 : i32
    %113 = tpu.dynamic_rotate %35 by %c55_i32 dim 1 : vector<2x256xf32>, i32 -> vector<2x256xf32>
    %c55_i32_48 = arith.constant 55 : i32
    %114 = tpu.dynamic_rotate %36 by %c55_i32_48 dim 1 : vector<2x256xf32>, i32 -> vector<2x256xf32>
    %c8 = arith.constant 8 : index
    %c0_49 = arith.constant 0 : index
    %115 = vector.load %arg4[%c8, %c0_49] : memref<27x256xf32, #tpu.memory_space<vmem>>, vector<1x256xf32>
    %116 = vector.broadcast %115 : vector<1x256xf32> to vector<2x256xf32>
    %117 = arith.mulf %116, %113 : vector<2x256xf32>
    %c8_50 = arith.constant 8 : index
    %c0_51 = arith.constant 0 : index
    %118 = vector.load %arg5[%c8_50, %c0_51] : memref<27x256xf32, #tpu.memory_space<vmem>>, vector<1x256xf32>
    %119 = vector.broadcast %118 : vector<1x256xf32> to vector<2x256xf32>
    %120 = arith.mulf %119, %114 : vector<2x256xf32>
    %121 = arith.addf %117, %120 : vector<2x256xf32>
    %122 = arith.addf %82, %121 : vector<2x256xf32>
    %c9_i32 = arith.constant 9 : i32
    %123 = tpu.dynamic_rotate %35 by %c9_i32 dim 1 : vector<2x256xf32>, i32 -> vector<2x256xf32>
    %c9_i32_52 = arith.constant 9 : i32
    %124 = tpu.dynamic_rotate %36 by %c9_i32_52 dim 1 : vector<2x256xf32>, i32 -> vector<2x256xf32>
    %c9 = arith.constant 9 : index
    %c0_53 = arith.constant 0 : index
    %125 = vector.load %arg4[%c9, %c0_53] : memref<27x256xf32, #tpu.memory_space<vmem>>, vector<1x256xf32>
    %126 = vector.broadcast %125 : vector<1x256xf32> to vector<2x256xf32>
    %127 = arith.mulf %126, %123 : vector<2x256xf32>
    %c9_54 = arith.constant 9 : index
    %c0_55 = arith.constant 0 : index
    %128 = vector.load %arg5[%c9_54, %c0_55] : memref<27x256xf32, #tpu.memory_space<vmem>>, vector<1x256xf32>
    %129 = vector.broadcast %128 : vector<1x256xf32> to vector<2x256xf32>
    %130 = arith.mulf %129, %124 : vector<2x256xf32>
    %131 = arith.addf %127, %130 : vector<2x256xf32>
    %132 = arith.addf %92, %131 : vector<2x256xf32>
    %c8_i32 = arith.constant 8 : i32
    %133 = tpu.dynamic_rotate %35 by %c8_i32 dim 1 : vector<2x256xf32>, i32 -> vector<2x256xf32>
    %c8_i32_56 = arith.constant 8 : i32
    %134 = tpu.dynamic_rotate %36 by %c8_i32_56 dim 1 : vector<2x256xf32>, i32 -> vector<2x256xf32>
    %c10 = arith.constant 10 : index
    %c0_57 = arith.constant 0 : index
    %135 = vector.load %arg4[%c10, %c0_57] : memref<27x256xf32, #tpu.memory_space<vmem>>, vector<1x256xf32>
    %136 = vector.broadcast %135 : vector<1x256xf32> to vector<2x256xf32>
    %137 = arith.mulf %136, %133 : vector<2x256xf32>
    %c10_58 = arith.constant 10 : index
    %c0_59 = arith.constant 0 : index
    %138 = vector.load %arg5[%c10_58, %c0_59] : memref<27x256xf32, #tpu.memory_space<vmem>>, vector<1x256xf32>
    %139 = vector.broadcast %138 : vector<1x256xf32> to vector<2x256xf32>
    %140 = arith.mulf %139, %134 : vector<2x256xf32>
    %141 = arith.addf %137, %140 : vector<2x256xf32>
    %142 = arith.addf %102, %141 : vector<2x256xf32>
    %c7_i32 = arith.constant 7 : i32
    %143 = tpu.dynamic_rotate %35 by %c7_i32 dim 1 : vector<2x256xf32>, i32 -> vector<2x256xf32>
    %c7_i32_60 = arith.constant 7 : i32
    %144 = tpu.dynamic_rotate %36 by %c7_i32_60 dim 1 : vector<2x256xf32>, i32 -> vector<2x256xf32>
    %c11 = arith.constant 11 : index
    %c0_61 = arith.constant 0 : index
    %145 = vector.load %arg4[%c11, %c0_61] : memref<27x256xf32, #tpu.memory_space<vmem>>, vector<1x256xf32>
    %146 = vector.broadcast %145 : vector<1x256xf32> to vector<2x256xf32>
    %147 = arith.mulf %146, %143 : vector<2x256xf32>
    %c11_62 = arith.constant 11 : index
    %c0_63 = arith.constant 0 : index
    %148 = vector.load %arg5[%c11_62, %c0_63] : memref<27x256xf32, #tpu.memory_space<vmem>>, vector<1x256xf32>
    %149 = vector.broadcast %148 : vector<1x256xf32> to vector<2x256xf32>
    %150 = arith.mulf %149, %144 : vector<2x256xf32>
    %151 = arith.addf %147, %150 : vector<2x256xf32>
    %152 = arith.addf %112, %151 : vector<2x256xf32>
    %c1_i32 = arith.constant 1 : i32
    %153 = tpu.dynamic_rotate %35 by %c1_i32 dim 1 : vector<2x256xf32>, i32 -> vector<2x256xf32>
    %c1_i32_64 = arith.constant 1 : i32
    %154 = tpu.dynamic_rotate %36 by %c1_i32_64 dim 1 : vector<2x256xf32>, i32 -> vector<2x256xf32>
    %c12 = arith.constant 12 : index
    %c0_65 = arith.constant 0 : index
    %155 = vector.load %arg4[%c12, %c0_65] : memref<27x256xf32, #tpu.memory_space<vmem>>, vector<1x256xf32>
    %156 = vector.broadcast %155 : vector<1x256xf32> to vector<2x256xf32>
    %157 = arith.mulf %156, %153 : vector<2x256xf32>
    %c12_66 = arith.constant 12 : index
    %c0_67 = arith.constant 0 : index
    %158 = vector.load %arg5[%c12_66, %c0_67] : memref<27x256xf32, #tpu.memory_space<vmem>>, vector<1x256xf32>
    %159 = vector.broadcast %158 : vector<1x256xf32> to vector<2x256xf32>
    %160 = arith.mulf %159, %154 : vector<2x256xf32>
    %161 = arith.addf %157, %160 : vector<2x256xf32>
    %162 = arith.addf %122, %161 : vector<2x256xf32>
    %c13 = arith.constant 13 : index
    %c0_68 = arith.constant 0 : index
    %163 = vector.load %arg4[%c13, %c0_68] : memref<27x256xf32, #tpu.memory_space<vmem>>, vector<1x256xf32>
    %164 = vector.broadcast %163 : vector<1x256xf32> to vector<2x256xf32>
    %165 = arith.mulf %164, %35 : vector<2x256xf32>
    %c13_69 = arith.constant 13 : index
    %c0_70 = arith.constant 0 : index
    %166 = vector.load %arg5[%c13_69, %c0_70] : memref<27x256xf32, #tpu.memory_space<vmem>>, vector<1x256xf32>
    %167 = vector.broadcast %166 : vector<1x256xf32> to vector<2x256xf32>
    %168 = arith.mulf %167, %36 : vector<2x256xf32>
    %169 = arith.addf %165, %168 : vector<2x256xf32>
    %170 = arith.addf %132, %169 : vector<2x256xf32>
    %c255_i32 = arith.constant 255 : i32
    %171 = tpu.dynamic_rotate %35 by %c255_i32 dim 1 : vector<2x256xf32>, i32 -> vector<2x256xf32>
    %c255_i32_71 = arith.constant 255 : i32
    %172 = tpu.dynamic_rotate %36 by %c255_i32_71 dim 1 : vector<2x256xf32>, i32 -> vector<2x256xf32>
    %c14 = arith.constant 14 : index
    %c0_72 = arith.constant 0 : index
    %173 = vector.load %arg4[%c14, %c0_72] : memref<27x256xf32, #tpu.memory_space<vmem>>, vector<1x256xf32>
    %174 = vector.broadcast %173 : vector<1x256xf32> to vector<2x256xf32>
    %175 = arith.mulf %174, %171 : vector<2x256xf32>
    %c14_73 = arith.constant 14 : index
    %c0_74 = arith.constant 0 : index
    %176 = vector.load %arg5[%c14_73, %c0_74] : memref<27x256xf32, #tpu.memory_space<vmem>>, vector<1x256xf32>
    %177 = vector.broadcast %176 : vector<1x256xf32> to vector<2x256xf32>
    %178 = arith.mulf %177, %172 : vector<2x256xf32>
    %179 = arith.addf %175, %178 : vector<2x256xf32>
    %180 = arith.addf %142, %179 : vector<2x256xf32>
    %c249_i32 = arith.constant 249 : i32
    %181 = tpu.dynamic_rotate %35 by %c249_i32 dim 1 : vector<2x256xf32>, i32 -> vector<2x256xf32>
    %c249_i32_75 = arith.constant 249 : i32
    %182 = tpu.dynamic_rotate %36 by %c249_i32_75 dim 1 : vector<2x256xf32>, i32 -> vector<2x256xf32>
    %c15 = arith.constant 15 : index
    %c0_76 = arith.constant 0 : index
    %183 = vector.load %arg4[%c15, %c0_76] : memref<27x256xf32, #tpu.memory_space<vmem>>, vector<1x256xf32>
    %184 = vector.broadcast %183 : vector<1x256xf32> to vector<2x256xf32>
    %185 = arith.mulf %184, %181 : vector<2x256xf32>
    %c15_77 = arith.constant 15 : index
    %c0_78 = arith.constant 0 : index
    %186 = vector.load %arg5[%c15_77, %c0_78] : memref<27x256xf32, #tpu.memory_space<vmem>>, vector<1x256xf32>
    %187 = vector.broadcast %186 : vector<1x256xf32> to vector<2x256xf32>
    %188 = arith.mulf %187, %182 : vector<2x256xf32>
    %189 = arith.addf %185, %188 : vector<2x256xf32>
    %190 = arith.addf %152, %189 : vector<2x256xf32>
    %c248_i32 = arith.constant 248 : i32
    %191 = tpu.dynamic_rotate %35 by %c248_i32 dim 1 : vector<2x256xf32>, i32 -> vector<2x256xf32>
    %c248_i32_79 = arith.constant 248 : i32
    %192 = tpu.dynamic_rotate %36 by %c248_i32_79 dim 1 : vector<2x256xf32>, i32 -> vector<2x256xf32>
    %c16 = arith.constant 16 : index
    %c0_80 = arith.constant 0 : index
    %193 = vector.load %arg4[%c16, %c0_80] : memref<27x256xf32, #tpu.memory_space<vmem>>, vector<1x256xf32>
    %194 = vector.broadcast %193 : vector<1x256xf32> to vector<2x256xf32>
    %195 = arith.mulf %194, %191 : vector<2x256xf32>
    %c16_81 = arith.constant 16 : index
    %c0_82 = arith.constant 0 : index
    %196 = vector.load %arg5[%c16_81, %c0_82] : memref<27x256xf32, #tpu.memory_space<vmem>>, vector<1x256xf32>
    %197 = vector.broadcast %196 : vector<1x256xf32> to vector<2x256xf32>
    %198 = arith.mulf %197, %192 : vector<2x256xf32>
    %199 = arith.addf %195, %198 : vector<2x256xf32>
    %200 = arith.addf %162, %199 : vector<2x256xf32>
    %c247_i32 = arith.constant 247 : i32
    %201 = tpu.dynamic_rotate %35 by %c247_i32 dim 1 : vector<2x256xf32>, i32 -> vector<2x256xf32>
    %c247_i32_83 = arith.constant 247 : i32
    %202 = tpu.dynamic_rotate %36 by %c247_i32_83 dim 1 : vector<2x256xf32>, i32 -> vector<2x256xf32>
    %c17 = arith.constant 17 : index
    %c0_84 = arith.constant 0 : index
    %203 = vector.load %arg4[%c17, %c0_84] : memref<27x256xf32, #tpu.memory_space<vmem>>, vector<1x256xf32>
    %204 = vector.broadcast %203 : vector<1x256xf32> to vector<2x256xf32>
    %205 = arith.mulf %204, %201 : vector<2x256xf32>
    %c17_85 = arith.constant 17 : index
    %c0_86 = arith.constant 0 : index
    %206 = vector.load %arg5[%c17_85, %c0_86] : memref<27x256xf32, #tpu.memory_space<vmem>>, vector<1x256xf32>
    %207 = vector.broadcast %206 : vector<1x256xf32> to vector<2x256xf32>
    %208 = arith.mulf %207, %202 : vector<2x256xf32>
    %209 = arith.addf %205, %208 : vector<2x256xf32>
    %210 = arith.addf %170, %209 : vector<2x256xf32>
    %c201_i32 = arith.constant 201 : i32
    %211 = tpu.dynamic_rotate %35 by %c201_i32 dim 1 : vector<2x256xf32>, i32 -> vector<2x256xf32>
    %c201_i32_87 = arith.constant 201 : i32
    %212 = tpu.dynamic_rotate %36 by %c201_i32_87 dim 1 : vector<2x256xf32>, i32 -> vector<2x256xf32>
    %c18 = arith.constant 18 : index
    %c0_88 = arith.constant 0 : index
    %213 = vector.load %arg4[%c18, %c0_88] : memref<27x256xf32, #tpu.memory_space<vmem>>, vector<1x256xf32>
    %214 = vector.broadcast %213 : vector<1x256xf32> to vector<2x256xf32>
    %215 = arith.mulf %214, %211 : vector<2x256xf32>
    %c18_89 = arith.constant 18 : index
    %c0_90 = arith.constant 0 : index
    %216 = vector.load %arg5[%c18_89, %c0_90] : memref<27x256xf32, #tpu.memory_space<vmem>>, vector<1x256xf32>
    %217 = vector.broadcast %216 : vector<1x256xf32> to vector<2x256xf32>
    %218 = arith.mulf %217, %212 : vector<2x256xf32>
    %219 = arith.addf %215, %218 : vector<2x256xf32>
    %220 = arith.addf %180, %219 : vector<2x256xf32>
    %c200_i32 = arith.constant 200 : i32
    %221 = tpu.dynamic_rotate %35 by %c200_i32 dim 1 : vector<2x256xf32>, i32 -> vector<2x256xf32>
    %c200_i32_91 = arith.constant 200 : i32
    %222 = tpu.dynamic_rotate %36 by %c200_i32_91 dim 1 : vector<2x256xf32>, i32 -> vector<2x256xf32>
    %c19 = arith.constant 19 : index
    %c0_92 = arith.constant 0 : index
    %223 = vector.load %arg4[%c19, %c0_92] : memref<27x256xf32, #tpu.memory_space<vmem>>, vector<1x256xf32>
    %224 = vector.broadcast %223 : vector<1x256xf32> to vector<2x256xf32>
    %225 = arith.mulf %224, %221 : vector<2x256xf32>
    %c19_93 = arith.constant 19 : index
    %c0_94 = arith.constant 0 : index
    %226 = vector.load %arg5[%c19_93, %c0_94] : memref<27x256xf32, #tpu.memory_space<vmem>>, vector<1x256xf32>
    %227 = vector.broadcast %226 : vector<1x256xf32> to vector<2x256xf32>
    %228 = arith.mulf %227, %222 : vector<2x256xf32>
    %229 = arith.addf %225, %228 : vector<2x256xf32>
    %230 = arith.addf %190, %229 : vector<2x256xf32>
    %c199_i32 = arith.constant 199 : i32
    %231 = tpu.dynamic_rotate %35 by %c199_i32 dim 1 : vector<2x256xf32>, i32 -> vector<2x256xf32>
    %c199_i32_95 = arith.constant 199 : i32
    %232 = tpu.dynamic_rotate %36 by %c199_i32_95 dim 1 : vector<2x256xf32>, i32 -> vector<2x256xf32>
    %c20 = arith.constant 20 : index
    %c0_96 = arith.constant 0 : index
    %233 = vector.load %arg4[%c20, %c0_96] : memref<27x256xf32, #tpu.memory_space<vmem>>, vector<1x256xf32>
    %234 = vector.broadcast %233 : vector<1x256xf32> to vector<2x256xf32>
    %235 = arith.mulf %234, %231 : vector<2x256xf32>
    %c20_97 = arith.constant 20 : index
    %c0_98 = arith.constant 0 : index
    %236 = vector.load %arg5[%c20_97, %c0_98] : memref<27x256xf32, #tpu.memory_space<vmem>>, vector<1x256xf32>
    %237 = vector.broadcast %236 : vector<1x256xf32> to vector<2x256xf32>
    %238 = arith.mulf %237, %232 : vector<2x256xf32>
    %239 = arith.addf %235, %238 : vector<2x256xf32>
    %240 = arith.addf %200, %239 : vector<2x256xf32>
    %c193_i32 = arith.constant 193 : i32
    %241 = tpu.dynamic_rotate %35 by %c193_i32 dim 1 : vector<2x256xf32>, i32 -> vector<2x256xf32>
    %c193_i32_99 = arith.constant 193 : i32
    %242 = tpu.dynamic_rotate %36 by %c193_i32_99 dim 1 : vector<2x256xf32>, i32 -> vector<2x256xf32>
    %c21 = arith.constant 21 : index
    %c0_100 = arith.constant 0 : index
    %243 = vector.load %arg4[%c21, %c0_100] : memref<27x256xf32, #tpu.memory_space<vmem>>, vector<1x256xf32>
    %244 = vector.broadcast %243 : vector<1x256xf32> to vector<2x256xf32>
    %245 = arith.mulf %244, %241 : vector<2x256xf32>
    %c21_101 = arith.constant 21 : index
    %c0_102 = arith.constant 0 : index
    %246 = vector.load %arg5[%c21_101, %c0_102] : memref<27x256xf32, #tpu.memory_space<vmem>>, vector<1x256xf32>
    %247 = vector.broadcast %246 : vector<1x256xf32> to vector<2x256xf32>
    %248 = arith.mulf %247, %242 : vector<2x256xf32>
    %249 = arith.addf %245, %248 : vector<2x256xf32>
    %250 = arith.addf %210, %249 : vector<2x256xf32>
    %c192_i32 = arith.constant 192 : i32
    %251 = tpu.dynamic_rotate %35 by %c192_i32 dim 1 : vector<2x256xf32>, i32 -> vector<2x256xf32>
    %c192_i32_103 = arith.constant 192 : i32
    %252 = tpu.dynamic_rotate %36 by %c192_i32_103 dim 1 : vector<2x256xf32>, i32 -> vector<2x256xf32>
    %c22 = arith.constant 22 : index
    %c0_104 = arith.constant 0 : index
    %253 = vector.load %arg4[%c22, %c0_104] : memref<27x256xf32, #tpu.memory_space<vmem>>, vector<1x256xf32>
    %254 = vector.broadcast %253 : vector<1x256xf32> to vector<2x256xf32>
    %255 = arith.mulf %254, %251 : vector<2x256xf32>
    %c22_105 = arith.constant 22 : index
    %c0_106 = arith.constant 0 : index
    %256 = vector.load %arg5[%c22_105, %c0_106] : memref<27x256xf32, #tpu.memory_space<vmem>>, vector<1x256xf32>
    %257 = vector.broadcast %256 : vector<1x256xf32> to vector<2x256xf32>
    %258 = arith.mulf %257, %252 : vector<2x256xf32>
    %259 = arith.addf %255, %258 : vector<2x256xf32>
    %260 = arith.addf %220, %259 : vector<2x256xf32>
    %c191_i32 = arith.constant 191 : i32
    %261 = tpu.dynamic_rotate %35 by %c191_i32 dim 1 : vector<2x256xf32>, i32 -> vector<2x256xf32>
    %c191_i32_107 = arith.constant 191 : i32
    %262 = tpu.dynamic_rotate %36 by %c191_i32_107 dim 1 : vector<2x256xf32>, i32 -> vector<2x256xf32>
    %c23 = arith.constant 23 : index
    %c0_108 = arith.constant 0 : index
    %263 = vector.load %arg4[%c23, %c0_108] : memref<27x256xf32, #tpu.memory_space<vmem>>, vector<1x256xf32>
    %264 = vector.broadcast %263 : vector<1x256xf32> to vector<2x256xf32>
    %265 = arith.mulf %264, %261 : vector<2x256xf32>
    %c23_109 = arith.constant 23 : index
    %c0_110 = arith.constant 0 : index
    %266 = vector.load %arg5[%c23_109, %c0_110] : memref<27x256xf32, #tpu.memory_space<vmem>>, vector<1x256xf32>
    %267 = vector.broadcast %266 : vector<1x256xf32> to vector<2x256xf32>
    %268 = arith.mulf %267, %262 : vector<2x256xf32>
    %269 = arith.addf %265, %268 : vector<2x256xf32>
    %270 = arith.addf %230, %269 : vector<2x256xf32>
    %c185_i32 = arith.constant 185 : i32
    %271 = tpu.dynamic_rotate %35 by %c185_i32 dim 1 : vector<2x256xf32>, i32 -> vector<2x256xf32>
    %c185_i32_111 = arith.constant 185 : i32
    %272 = tpu.dynamic_rotate %36 by %c185_i32_111 dim 1 : vector<2x256xf32>, i32 -> vector<2x256xf32>
    %c24 = arith.constant 24 : index
    %c0_112 = arith.constant 0 : index
    %273 = vector.load %arg4[%c24, %c0_112] : memref<27x256xf32, #tpu.memory_space<vmem>>, vector<1x256xf32>
    %274 = vector.broadcast %273 : vector<1x256xf32> to vector<2x256xf32>
    %275 = arith.mulf %274, %271 : vector<2x256xf32>
    %c24_113 = arith.constant 24 : index
    %c0_114 = arith.constant 0 : index
    %276 = vector.load %arg5[%c24_113, %c0_114] : memref<27x256xf32, #tpu.memory_space<vmem>>, vector<1x256xf32>
    %277 = vector.broadcast %276 : vector<1x256xf32> to vector<2x256xf32>
    %278 = arith.mulf %277, %272 : vector<2x256xf32>
    %279 = arith.addf %275, %278 : vector<2x256xf32>
    %280 = arith.addf %240, %279 : vector<2x256xf32>
    %c184_i32 = arith.constant 184 : i32
    %281 = tpu.dynamic_rotate %35 by %c184_i32 dim 1 : vector<2x256xf32>, i32 -> vector<2x256xf32>
    %c184_i32_115 = arith.constant 184 : i32
    %282 = tpu.dynamic_rotate %36 by %c184_i32_115 dim 1 : vector<2x256xf32>, i32 -> vector<2x256xf32>
    %c25 = arith.constant 25 : index
    %c0_116 = arith.constant 0 : index
    %283 = vector.load %arg4[%c25, %c0_116] : memref<27x256xf32, #tpu.memory_space<vmem>>, vector<1x256xf32>
    %284 = vector.broadcast %283 : vector<1x256xf32> to vector<2x256xf32>
    %285 = arith.mulf %284, %281 : vector<2x256xf32>
    %c25_117 = arith.constant 25 : index
    %c0_118 = arith.constant 0 : index
    %286 = vector.load %arg5[%c25_117, %c0_118] : memref<27x256xf32, #tpu.memory_space<vmem>>, vector<1x256xf32>
    %287 = vector.broadcast %286 : vector<1x256xf32> to vector<2x256xf32>
    %288 = arith.mulf %287, %282 : vector<2x256xf32>
    %289 = arith.addf %285, %288 : vector<2x256xf32>
    %290 = arith.addf %250, %289 : vector<2x256xf32>
    %c183_i32 = arith.constant 183 : i32
    %291 = tpu.dynamic_rotate %35 by %c183_i32 dim 1 : vector<2x256xf32>, i32 -> vector<2x256xf32>
    %c183_i32_119 = arith.constant 183 : i32
    %292 = tpu.dynamic_rotate %36 by %c183_i32_119 dim 1 : vector<2x256xf32>, i32 -> vector<2x256xf32>
    %c26 = arith.constant 26 : index
    %c0_120 = arith.constant 0 : index
    %293 = vector.load %arg4[%c26, %c0_120] : memref<27x256xf32, #tpu.memory_space<vmem>>, vector<1x256xf32>
    %294 = vector.broadcast %293 : vector<1x256xf32> to vector<2x256xf32>
    %295 = arith.mulf %294, %291 : vector<2x256xf32>
    %c26_121 = arith.constant 26 : index
    %c0_122 = arith.constant 0 : index
    %296 = vector.load %arg5[%c26_121, %c0_122] : memref<27x256xf32, #tpu.memory_space<vmem>>, vector<1x256xf32>
    %297 = vector.broadcast %296 : vector<1x256xf32> to vector<2x256xf32>
    %298 = arith.mulf %297, %292 : vector<2x256xf32>
    %299 = arith.addf %295, %298 : vector<2x256xf32>
    %300 = arith.addf %260, %299 : vector<2x256xf32>
    %301 = arith.addf %280, %290 : vector<2x256xf32>
    %302 = arith.addf %300, %270 : vector<2x256xf32>
    %303 = arith.addf %301, %302 : vector<2x256xf32>
    %304 = arith.negf %303 : vector<2x256xf32>
    %305 = math.exp %304 : vector<2x256xf32>
    %cst_123 = arith.constant 1.000000e+00 : f32
    %306 = vector.broadcast %cst_123 : f32 to vector<2x256xf32>
    %307 = arith.addf %306, %305 : vector<2x256xf32>
    %308 = arith.divf %306, %307 : vector<2x256xf32>
    %309 = vector.shape_cast %308 : vector<2x256xf32> to vector<2x1x256xf32>
    %310 = vector.broadcast %309 : vector<2x1x256xf32> to vector<2x16x256xf32>
    %311 = arith.mulf %32, %310 : vector<2x16x256xf32>
    %cst_124 = arith.constant 0.000000e+00 : f32
    %312 = vector.broadcast %cst_124 : f32 to vector<2x16x256xf32>
    %313 = arith.maximumf %311, %312 : vector<2x16x256xf32>
    %c0_125 = arith.constant 0 : index
    %c0_126 = arith.constant 0 : index
    %c0_127 = arith.constant 0 : index
    %314 = vector.load %arg6[%c0_125, %c0_126, %c0_127] : memref<5x16x256xf32, #tpu.memory_space<vmem>>, vector<1x16x256xf32>
    %315 = vector.shape_cast %314 : vector<1x16x256xf32> to vector<16x256xf32>
    %316 = vector.shape_cast %315 : vector<16x256xf32> to vector<1x16x256xf32>
    %317 = vector.broadcast %316 : vector<1x16x256xf32> to vector<2x16x256xf32>
    %318 = arith.mulf %317, %313 : vector<2x16x256xf32>
    %c192_i32_128 = arith.constant 192 : i32
    %319 = tpu.dynamic_rotate %313 by %c192_i32_128 dim 2 : vector<2x16x256xf32>, i32 -> vector<2x16x256xf32>
    %c1_129 = arith.constant 1 : index
    %c0_130 = arith.constant 0 : index
    %c0_131 = arith.constant 0 : index
    %320 = vector.load %arg6[%c1_129, %c0_130, %c0_131] : memref<5x16x256xf32, #tpu.memory_space<vmem>>, vector<1x16x256xf32>
    %321 = vector.shape_cast %320 : vector<1x16x256xf32> to vector<16x256xf32>
    %322 = vector.shape_cast %321 : vector<16x256xf32> to vector<1x16x256xf32>
    %323 = vector.broadcast %322 : vector<1x16x256xf32> to vector<2x16x256xf32>
    %324 = arith.mulf %323, %319 : vector<2x16x256xf32>
    %325 = arith.addf %318, %324 : vector<2x16x256xf32>
    %c128_i32 = arith.constant 128 : i32
    %326 = tpu.dynamic_rotate %313 by %c128_i32 dim 2 : vector<2x16x256xf32>, i32 -> vector<2x16x256xf32>
    %c2_132 = arith.constant 2 : index
    %c0_133 = arith.constant 0 : index
    %c0_134 = arith.constant 0 : index
    %327 = vector.load %arg6[%c2_132, %c0_133, %c0_134] : memref<5x16x256xf32, #tpu.memory_space<vmem>>, vector<1x16x256xf32>
    %328 = vector.shape_cast %327 : vector<1x16x256xf32> to vector<16x256xf32>
    %329 = vector.shape_cast %328 : vector<16x256xf32> to vector<1x16x256xf32>
    %330 = vector.broadcast %329 : vector<1x16x256xf32> to vector<2x16x256xf32>
    %331 = arith.mulf %330, %326 : vector<2x16x256xf32>
    %332 = arith.addf %325, %331 : vector<2x16x256xf32>
    %cst_135 = arith.constant 0.000000e+00 : f32
    %333 = vector.broadcast %cst_135 : f32 to vector<2x16x256xf32>
    %334 = arith.maximumf %332, %333 : vector<2x16x256xf32>
    %c3_136 = arith.constant 3 : index
    %c0_137 = arith.constant 0 : index
    %c0_138 = arith.constant 0 : index
    %335 = vector.load %arg6[%c3_136, %c0_137, %c0_138] : memref<5x16x256xf32, #tpu.memory_space<vmem>>, vector<1x16x256xf32>
    %336 = vector.shape_cast %335 : vector<1x16x256xf32> to vector<16x256xf32>
    %337 = vector.shape_cast %336 : vector<16x256xf32> to vector<1x16x256xf32>
    %338 = vector.broadcast %337 : vector<1x16x256xf32> to vector<2x16x256xf32>
    %339 = arith.mulf %338, %334 : vector<2x16x256xf32>
    %c192_i32_139 = arith.constant 192 : i32
    %340 = tpu.dynamic_rotate %334 by %c192_i32_139 dim 2 : vector<2x16x256xf32>, i32 -> vector<2x16x256xf32>
    %c4_140 = arith.constant 4 : index
    %c0_141 = arith.constant 0 : index
    %c0_142 = arith.constant 0 : index
    %341 = vector.load %arg6[%c4_140, %c0_141, %c0_142] : memref<5x16x256xf32, #tpu.memory_space<vmem>>, vector<1x16x256xf32>
    %342 = vector.shape_cast %341 : vector<1x16x256xf32> to vector<16x256xf32>
    %343 = vector.shape_cast %342 : vector<16x256xf32> to vector<1x16x256xf32>
    %344 = vector.broadcast %343 : vector<1x16x256xf32> to vector<2x16x256xf32>
    %345 = arith.mulf %344, %340 : vector<2x16x256xf32>
    %346 = arith.addf %339, %345 : vector<2x16x256xf32>
    %cst_143 = arith.constant 0.000000e+00 : f32
    %347 = vector.broadcast %cst_143 : f32 to vector<2x16x256xf32>
    %348 = arith.maximumf %346, %347 : vector<2x16x256xf32>
    %c0_144 = arith.constant 0 : index
    %c0_145 = arith.constant 0 : index
    %c0_146 = arith.constant 0 : index
    %349 = vector.load %arg7[%c0_144, %c0_145, %c0_146] : memref<2x16x256xf32, #tpu.memory_space<vmem>>, vector<2x16x256xf32>
    tpu.vector_store %arg7[%c0_144, %c0_145, %c0_146], %348 {strides = array<i32>} : memref<2x16x256xf32, #tpu.memory_space<vmem>>, vector<2x16x256xf32>,
    return
  }
  func.func @transform_0(%arg0: i32) -> (i32, i32, i32) {
    %c0_i32 = arith.constant 0 : i32
    %c0_i32_0 = arith.constant 0 : i32
    %c0_i32_1 = arith.constant 0 : i32
    return %arg0, %c0_i32, %c0_i32_0 : i32, i32, i32
  }
  func.func @transform_1(%arg0: i32) -> (i32, i32) {
    %c0_i32 = arith.constant 0 : i32
    %c0_i32_0 = arith.constant 0 : i32
    %c0_i32_1 = arith.constant 0 : i32
    return %c0_i32, %c0_i32_0 : i32, i32
  }
  func.func @transform_2(%arg0: i32) -> (i32, i32) {
    %c0_i32 = arith.constant 0 : i32
    %c0_i32_0 = arith.constant 0 : i32
    %c0_i32_1 = arith.constant 0 : i32
    return %c0_i32, %c0_i32_0 : i32, i32
  }
  func.func @transform_3(%arg0: i32) -> (i32, i32) {
    %c0_i32 = arith.constant 0 : i32
    %c0_i32_0 = arith.constant 0 : i32
    %c0_i32_1 = arith.constant 0 : i32
    return %c0_i32, %c0_i32_0 : i32, i32
  }
  func.func @transform_4(%arg0: i32) -> (i32, i32) {
    %c0_i32 = arith.constant 0 : i32
    %c0_i32_0 = arith.constant 0 : i32
    %c0_i32_1 = arith.constant 0 : i32
    return %c0_i32, %c0_i32_0 : i32, i32
  }
  func.func @transform_5(%arg0: i32) -> (i32, i32, i32) {
    %c0_i32 = arith.constant 0 : i32
    %c0_i32_0 = arith.constant 0 : i32
    %c0_i32_1 = arith.constant 0 : i32
    %c0_i32_2 = arith.constant 0 : i32
    return %c0_i32, %c0_i32_0, %c0_i32_1 : i32, i32, i32
  }
  func.func @transform_6(%arg0: i32) -> (i32, i32, i32) {
    %c0_i32 = arith.constant 0 : i32
    %c0_i32_0 = arith.constant 0 : i32
    %c0_i32_1 = arith.constant 0 : i32
    return %arg0, %c0_i32, %c0_i32_0 : i32, i32, i32
  }
}

</mosaic_0001>

<bundles_post_ra>
// kernel: tpu_custom_call.1
= control target key start
LH: loop header
LB: loop body
LE: loop exit
PB: predicated region body
PF: predicated region fallthrough
CT: control target
= control target key end

     0   :  { %11 = vsyncpa [#allocation3], 0  ;;  %s3349_s0 = inlined_call_operand.hbm [shape: f32[2,16,256], index: 0, kind: input, shape index: {}]   ;;  %s3350_s1 = inlined_call_operand.vmem [shape: f32[16,1], index: 1, kind: input, shape index: {}]   ;;  %s3351_s2 = inlined_call_operand.vmem [shape: f32[16,1], index: 2, kind: input, shape index: {}]   ;;  %s3352_s3 = inlined_call_operand.hbm [shape: f32[27,256], index: 3, kind: input, shape index: {}]   ;;  %s3353_s4 = inlined_call_operand.hbm [shape: f32[27,256], index: 4, kind: input, shape index: {}]   ;;  %s3354_s5 = inlined_call_operand.hbm [shape: f32[5,16,256], index: 5, kind: input, shape index: {}]   ;;  %s3355_s6 = inlined_call_operand.hbm [shape: f32[2,16,256], index: 6, kind: output, shape index: {}]  }
   0x1   :  { %12 = vsyncpa [#allocation6], 0 }
   0x2   :  { %13 = vsyncpa [#allocation9], 0 }
   0x3   :  { %14 = vsyncpa [#allocation4], 0  ;;  %s1883_s21 = smov [#allocation5]   ;;  %s1884_s23 = smov [#allocation2]  }
   0x4   :  { %s36_s22 = sshll.u32 %s1883_s21, 4  ;;  %s20_s24 = sshll.u32 %s1884_s23, 4  ;;  %s37_s22 = int_to_ptr.vmem [resolvable:$true] %s36_s22  ;;  %s1944_s24 = int_to_ptr.vmem [resolvable:$true] %s20_s24 }
   0x5   :  { %s1765_s27 = scalar_lea.hbm %s3352_s3, 1024 }
   0x6   :  { %p1766_p0 = scmp.ne.s32.totalorder %s3352_s3, %s1765_s27  ;;  %p1769_p1 = scmp.lt.u32.totalorder %s1765_s27, %s3352_s3 }
   0x8   :  { %p1771_p2 = pnand %p1769_p1, %p1766_p0 }
   0xa   :  { %1774 = shalt.err (!%p1771_p2)
}
   0xb   :  { %s1775_s8 = scalar_lea.vmem %s37_s22, 1024  ;;  %p1780_p4 = scmp.lt.s32.totalorder %s37_s22, %s37_s22 }
   0xc   :  { %p1776_p3 = scmp.ne.s32.totalorder %s37_s22, %s1775_s8  ;;  %p1781_p5 = scmp.lt.s32.totalorder %s1775_s8, %s1775_s8 }
   0xe   :  { %p1782_p6 = por %p1781_p5, %p1780_p4 }
  0x10   :  { %p1783_p7 = pnand %p1782_p6, %p1776_p3 }
  0x12   :  { %1786 = shalt.err (!%p1783_p7)
}
  0x13   :  { %s1885_s9 = smov 256   ;;  %s1886_s10 = smov 16  }
  0x14   :  { %42 = dma.hbm_to_vmem [thread:$0]  %s3352_s3, 1024, %s37_s22, [#allocation6], %s1885_s9, %s1885_s9, %s1886_s10  }
  0x15   :  { %s1787_s15 = scalar_lea.hbm %s3349_s0, 1024 }
  0x16   :  { %p1788_p8 = scmp.ne.s32.totalorder %s3349_s0, %s1787_s15  ;;  %p1791_p9 = scmp.lt.u32.totalorder %s1787_s15, %s3349_s0 }
  0x18   :  { %p1793_p10 = pnand %p1791_p9, %p1788_p8 }
  0x1a   :  { %1796 = shalt.err (!%p1793_p10)
}
  0x1b   :  { %s1797_s20 = scalar_lea.vmem %s1944_s24, 1024  ;;  %p1802_p12 = scmp.lt.s32.totalorder %s1944_s24, %s1944_s24 }
  0x1c   :  { %p1798_p11 = scmp.ne.s32.totalorder %s1944_s24, %s1797_s20  ;;  %p1803_p13 = scmp.lt.s32.totalorder %s1797_s20, %s1797_s20 }
  0x1e   :  { %p1804_p0 = por %p1803_p13, %p1802_p12 }
  0x20   :  { %p1805_p1 = pnand %p1804_p0, %p1798_p11 }
  0x22   :  { %1808 = shalt.err (!%p1805_p1)
}
  0x23   :  { %26 = dma.hbm_to_vmem [thread:$0]  %s3349_s0, 1024, %s1944_s24, [#allocation3], %s1885_s9, %s1885_s9, %s1886_s10  }
  0x24   :  { %s1887_s22 = smov [#allocation7]   ;;  %s1888_s25 = smov [#allocation8]  }
  0x25   :  { %s48_s23 = sshll.u32 %s1887_s22, 4  ;;  %s60_s26 = sshll.u32 %s1888_s25, 4  ;;  %s49_s23 = int_to_ptr.vmem [resolvable:$true] %s48_s23  ;;  %s1981_s26 = int_to_ptr.vmem [resolvable:$true] %s60_s26 }
  0x26   :  { %s1809_s29 = scalar_lea.hbm %s3353_s4, 1024 }
  0x27   :  { %p1810_p2 = scmp.ne.s32.totalorder %s3353_s4, %s1809_s29  ;;  %p1813_p3 = scmp.lt.u32.totalorder %s1809_s29, %s3353_s4 }
  0x29   :  { %p1815_p4 = pnand %p1813_p3, %p1810_p2 }
  0x2b   :  { %1818 = shalt.err (!%p1815_p4)
}
  0x2c   :  { %s1819_s0 = scalar_lea.vmem %s49_s23, 1024  ;;  %p1824_p6 = scmp.lt.s32.totalorder %s49_s23, %s49_s23 }
  0x2d   :  { %p1820_p5 = scmp.ne.s32.totalorder %s49_s23, %s1819_s0  ;;  %p1825_p7 = scmp.lt.s32.totalorder %s1819_s0, %s1819_s0 }
  0x2f   :  { %p1826_p8 = por %p1825_p7, %p1824_p6 }
  0x31   :  { %p1827_p9 = pnand %p1826_p8, %p1820_p5 }
  0x33   :  { %1830 = shalt.err (!%p1827_p9)
}
  0x34   :  { %54 = dma.hbm_to_vmem [thread:$0]  %s3353_s4, 1024, %s49_s23, [#allocation6], %s1885_s9, %s1885_s9, %s1886_s10  }
  0x35   :  { %s1831_s15 = scalar_lea.hbm %s3354_s5, 2560 }
  0x36   :  { %p1832_p10 = scmp.ne.s32.totalorder %s3354_s5, %s1831_s15  ;;  %p1835_p11 = scmp.lt.u32.totalorder %s1831_s15, %s3354_s5 }
  0x38   :  { %p1837_p12 = pnand %p1835_p11, %p1832_p10 }
  0x3a   :  { %1840 = shalt.err (!%p1837_p12)
}
  0x3b   :  { %s1841_s20 = scalar_lea.vmem %s1981_s26, 2560  ;;  %p1846_p0 = scmp.lt.s32.totalorder %s1981_s26, %s1981_s26 }
  0x3c   :  { %p1842_p13 = scmp.ne.s32.totalorder %s1981_s26, %s1841_s20  ;;  %p1847_p1 = scmp.lt.s32.totalorder %s1841_s20, %s1841_s20 }
  0x3e   :  { %p1848_p2 = por %p1847_p1, %p1846_p0 }
  0x40   :  { %p1849_p3 = pnand %p1848_p2, %p1842_p13 }
  0x42   :  { %1852 = shalt.err (!%p1849_p3)
}
  0x43   :  { %66 = dma.hbm_to_vmem [thread:$0]  %s3354_s5, 2560, %s1981_s26, [#allocation9], %s1885_s9, %s1885_s9, %s1886_s10  }
  0x44   :  { %1875 = dma.done.wait [#allocation3], 1024  }
  0x45   :  { %1876 = vsyncadd [#allocation3], 4294966272 }
  0x46   :  { %1877 = dma.done.wait [#allocation6], 2048  }
  0x47   :  { %1878 = vsyncadd [#allocation6], 4294965248 }
  0x48   :  { %1879 = dma.done.wait [#allocation9], 2560  }
  0x49   :  { %1880 = vsyncadd [#allocation9], 4294964736  ;;  %v2018_v0 = vld [vmem:[#allocation2 + $0x20] sm:$0xff]  ;;  %v2020_v1 = vld [vmem:[#allocation2 + $0x28] sm:$0xff]  ;;  %v1889_v16 = vmov 0   ;;  %vm127_vm0 = vcmask 7168  }
  0x4a   :  { %v2022_v2 = vld [vmem:[#allocation2] sm:$0xff]  ;;  %v93_v3 = vadd.f32 %v2020_v1, %v2018_v0  ;;  %v2026_v4 = vld [vmem:[#allocation2 + $0x8] sm:$0xff]  ;;  %v2028_v5 = vld [vmem:[#allocation2 + $0x30] sm:$0xff]  ;;  %v109_v15 = vmax.f32 %v2018_v0, %v2020_v1  ;;  %1740 = vset.pattern.permute.xlu1 %v1889_v16  ;;  %1739 = vset.pattern.permute.xlu0 %v1889_v16  ;;  %vm305_vm1 = vcmask 1041409   ;;  %s1891_s28 = smov 73   ;;  %s1892_s29 = smov 71  }
  0x4b   :  { %v2030_v6 = vld [vmem:[#allocation2 + $0x38] sm:$0xff]  ;;  %v87_v7 = vadd.f32 %v2026_v4, %v2022_v2  ;;  %v2034_v8 = vld [vmem:[#allocation2 + $0x10] sm:$0xff]  ;;  %v103_v13 = vmax.f32 %v2022_v2, %v2026_v4  ;;  %v115_v20 = vld [vmem:[%s3350_s1] sm:$0xff]  ;;  %s1893_s30 = smov 64   ;;  %s1894_s7 = smov 63  }
  0x4c   :  { %v2036_v9 = vld [vmem:[#allocation2 + $0x18] sm:$0xff]  ;;  %94 = vadd.xlane.f32.xlu1 %v93_v3  ;;  %v96_v10 = vadd.f32 %v2030_v6, %v2028_v5  ;;  %v112_v14 = vmax.f32 %v2028_v5, %v2030_v6  ;;  %v116_v22 = vld [vmem:[%s3350_s1 + $0x8] sm:$0xff]  ;;  %s1895_s8 = smov 57   ;;  %s1896_s11 = smov 65  }
  0x4d   :  { %88 = vadd.xlane.f32.xlu0 %v87_v7  ;;  %v90_v11 = vadd.f32 %v2036_v9, %v2034_v8  ;;  %v106_v12 = vmax.f32 %v2034_v8, %v2036_v9  ;;  %s1897_s0 = smov 56   ;;  %s1898_s24 = smov 55  }
  0x4e   :  { %s1899_s12 = smov 9   ;;  %s1900_s13 = smov 8  }
  0x4f   :  { %s1901_s14 = smov 7   ;;  %s1902_s15 = smov 1  }
  0x50   :  { %97 = vadd.xlane.f32.xlu1 %v96_v10  ;;  %s1903_s16 = smov 127   ;;  %s1904_s17 = smov 121  }
  0x51   :  { %91 = vadd.xlane.f32.xlu0 %v90_v11  ;;  %s1905_s18 = smov 120   ;;  %s1906_s19 = smov 119  }
  0x52   :  { %s1908_s20 = smov [#allocation10]  }
  0x53   :  { %s1693_s4 = sshll.u32 %s1908_s20, 4  ;;  %s1694_s4 = int_to_ptr.vmem [resolvable:$true] %s1693_s4 }
  0x54   :  { %107 = vmax.xlane.f32.xlu1 %v106_v12  ;;  %s1853_s3 = scalar_lea.vmem %s1694_s4, 1024  ;;  %p1858_p5 = scmp.lt.s32.totalorder %s1694_s4, %s1694_s4 }
  0x55   :  { %104 = vmax.xlane.f32.xlu0 %v103_v13  ;;  %p1854_p4 = scmp.ne.s32.totalorder %s1694_s4, %s1853_s3  ;;  %p1859_p6 = scmp.lt.s32.totalorder %s1853_s3, %s1853_s3 }
  0x57   :  { %p1860_p7 = por %p1859_p6, %p1858_p5 }
  0x58   :  { %113 = vmax.xlane.f32.xlu1 %v112_v14 }
  0x59   :  { %110 = vmax.xlane.f32.xlu0 %v109_v15  ;;  %v117_v15 = vld [vmem:[%s3351_s2] sm:$0xff]  ;;  %p1861_p8 = pnand %p1860_p7, %p1854_p4 }
  0xd9   :  { %v95_v17 = vpop.xlane.xlu1 %94 }
  0xda   :  { %v101_v18 = vmul.f32 0.00390625, %v95_v17  ;;  %v89_v19 = vpop.xlane.xlu0 %88 }
  0xdb   :  { %v99_v21 = vmul.f32 0.00390625, %v89_v19  ;;  %v118_v19 = vld [vmem:[%s3351_s2 + $0x8] sm:$0xff]  ;;  %s1890_s2 = smov 72  }
  0xdc   :  { %v121_v24 = vmul.f32 %v115_v20, %v101_v18 }
  0xdd   :  { %v98_v23 = vpop.xlane.xlu1 %97  ;;  %v119_v27 = vmul.f32 %v115_v20, %v99_v21 }
  0xde   :  { %v102_v25 = vmul.f32 0.00390625, %v98_v23  ;;  %v92_v26 = vpop.xlane.xlu0 %91  ;;  %v137_v32 = vsel %vm127_vm0, %v121_v24, 0.0 }
  0xdf   :  { %v100_v28 = vmul.f32 0.00390625, %v92_v26  ;;  %v128_v36 = vsel %vm127_vm0, %v119_v27, 0.0 }
  0xe0   :  { %v122_v29 = vmul.f32 %v116_v22, %v102_v25 }
  0xe1   :  { %v120_v30 = vmul.f32 %v116_v22, %v100_v28  ;;  %v108_v31 = vpop.xlane.xlu1 %107 }
  0xe2   :  { %v138_v33 = vsel %vm127_vm0, %v122_v29, 0.0  ;;  %v124_v34 = vmul.f32 %v116_v22, %v108_v31  ;;  %v105_v35 = vpop.xlane.xlu0 %104 }
  0xe3   :  { %v139_v37 = vadd.f32 %v138_v33, %v137_v32  ;;  %v129_v38 = vsel %vm127_vm0, %v120_v30, 0.0  ;;  %v123_v39 = vmul.f32 %v115_v20, %v105_v35 }
  0xe4   :  { %v130_v40 = vadd.f32 %v129_v38, %v128_v36  ;;  %v147_v41 = vsel %vm127_vm0, %v124_v34, 0.0 }
  0xe5   :  { %v140_v42 = vrot.slane %v139_v37, 4  ;;  %v146_v43 = vsel %vm127_vm0, %v123_v39, 0.0  ;;  %v114_v44 = vpop.xlane.xlu1 %113 }
  0xe6   :  { %v131_v45 = vrot.slane %v130_v40, 4  ;;  %v148_v46 = vadd.f32 %v147_v41, %v146_v43  ;;  %v126_v47 = vmul.f32 %v116_v22, %v114_v44  ;;  %v111_v48 = vpop.xlane.xlu0 %110 }
  0xe7   :  { %v141_v49 = vadd.f32 %v140_v42, %v139_v37  ;;  %v125_v50 = vmul.f32 %v115_v20, %v111_v48 }
  0xe8   :  { %v132_v51 = vadd.f32 %v131_v45, %v130_v40  ;;  %v149_v52 = vrot.slane %v148_v46, 4  ;;  %v156_v53 = vsel %vm127_vm0, %v126_v47, 0.0 }
  0xe9   :  { %v142_v54 = vrot.slane %v141_v49, 2  ;;  %v155_v55 = vsel %vm127_vm0, %v125_v50, 0.0 }
  0xea   :  { %v133_v56 = vrot.slane %v132_v51, 2  ;;  %v150_v57 = vadd.f32 %v149_v52, %v148_v46  ;;  %v157_v58 = vadd.f32 %v156_v53, %v155_v55 }
  0xeb   :  { %v143_v59 = vadd.f32 %v142_v54, %v141_v49 }
  0xec   :  { %v134_v60 = vadd.f32 %v133_v56, %v132_v51  ;;  %v151_v61 = vrot.slane %v150_v57, 2  ;;  %v158_v62 = vrot.slane %v157_v58, 4 }
  0xed   :  { %v144_v63 = vrot.slane %v143_v59, 1 }
  0xee   :  { %v135_v3 = vrot.slane %v134_v60, 1  ;;  %v152_v7 = vadd.f32 %v151_v61, %v150_v57  ;;  %v159_v10 = vadd.f32 %v158_v62, %v157_v58 }
  0xef   :  { %v145_v14 = vadd.f32 %v144_v63, %v143_v59 }
  0xf0   :  { %v136_v11 = vadd.f32 %v135_v3, %v134_v60  ;;  %v153_v12 = vrot.slane %v152_v7, 1  ;;  %v160_v13 = vrot.slane %v159_v10, 2 }
  0xf1   :  { %v165_v22 = vmax.f32 %v145_v14, 0.0 }
  0xf2   :  { %v164_v16 = vmax.f32 %v136_v11, 0.0  ;;  %v154_v17 = vadd.f32 %v153_v12, %v152_v7  ;;  %v161_v18 = vadd.f32 %v160_v13, %v159_v10 }
  0xf3   :  { %v170_v31 = vmul.f32 %v165_v22, %v117_v15  ;;  %v171_v32 = vmul.f32 %v165_v22, %v118_v19 }
  0xf4   :  { %v166_v20 = vmax.f32 %v154_v17, 0.0  ;;  %v162_v21 = vrot.slane %v161_v18, 1  ;;  %v168_v23 = vmul.f32 %v164_v16, %v117_v15  ;;  %v169_v24 = vmul.f32 %v164_v16, %v118_v19 }
  0xf6   :  { %v172_v25 = vmul.f32 %v166_v20, %v117_v15  ;;  %v173_v26 = vmul.f32 %v166_v20, %v118_v19  ;;  %v163_v27 = vadd.f32 %v162_v21, %v161_v18 }
  0xf8   :  { %v184_v28 = vadd.f32 %v172_v25, %v168_v23  ;;  %v185_v29 = vadd.f32 %v173_v26, %v169_v24  ;;  %v167_v30 = vmax.f32 %v163_v27, 0.0 }
  0xfa   :  { %v1707_v33 = vmul.f32 -1.442695, %v184_v28  ;;  %v1708_v34 = vmul.f32 -1.442695, %v185_v29  ;;  %v174_v35 = vmul.f32 %v167_v30, %v117_v15  ;;  %v175_v36 = vmul.f32 %v167_v30, %v118_v19 }
  0xfc   :  { %1741 = vpow2.f32 %v1707_v33  ;;  %v186_v37 = vadd.f32 %v174_v35, %v170_v31  ;;  %v187_v38 = vadd.f32 %v175_v36, %v171_v32 }
  0xfd   :  { %1743 = vpow2.f32 %v1708_v34 }
  0xfe   :  { %v1709_v39 = vmul.f32 -1.442695, %v186_v37  ;;  %v1710_v40 = vmul.f32 -1.442695, %v187_v38 }
 0x100   :  { %1745 = vpow2.f32 %v1709_v39 }
 0x101   :  { %1747 = vpow2.f32 %v1710_v40 }
 0x106   :  { %v1742_v41 = vpop.eup %1741 }
 0x107   :  { %v1744_v42 = vpop.eup %1743  ;;  %v200_v43 = vadd.f32 1.0, %v1742_v41 }
 0x108   :  { %v201_v44 = vadd.f32 1.0, %v1744_v42 }
 0x109   :  { %1749 = vrcp.f32 %v200_v43 }
 0x10a   :  { %v1746_v45 = vpop.eup %1745  ;;  %1751 = vrcp.f32 %v201_v44 }
 0x10b   :  { %v1748_v46 = vpop.eup %1747  ;;  %v202_v47 = vadd.f32 1.0, %v1746_v45 }
 0x10c   :  { %v203_v48 = vadd.f32 1.0, %v1748_v46 }
 0x10d   :  { %1753 = vrcp.f32 %v202_v47 }
 0x10e   :  { %1755 = vrcp.f32 %v203_v48 }
 0x113   :  { %v1750_v49 = vpop.eup %1749 }
 0x114   :  { %v1752_v50 = vpop.eup %1751  ;;  %214 = vperm.xlu0 %1739, %v1750_v49  }
 0x115   :  { %219 = vperm.xlu1 %1740, %v1752_v50  }
 0x117   :  { %v1754_v51 = vpop.eup %1753 }
 0x118   :  { %v1756_v52 = vpop.eup %1755 }
 0x119   :  { %224 = vperm.xlu1 %1740, %v1754_v51  }
 0x11d   :  { %229 = vperm.xlu1 %1740, %v1756_v52  }
 0x193   :  { %v215_v53 = vpop.permute.xlu0 %214 }
 0x194   :  { %v220_v54 = vpop.permute.xlu1 %219  ;;  %v2071_v55 = vmul.f32 %v215_v53, %v2022_v2  ;;  %v2074_v56 = vmul.f32 %v215_v53, %v2026_v4 }
 0x195   :  { %v2077_v57 = vmul.f32 %v220_v54, %v2034_v8  ;;  %v2080_v58 = vmul.f32 %v220_v54, %v2036_v9 }
 0x196   :  { %3417 = vst [vmem:[#allocation15_spill] sm:$0xff] %v2071_v55  ;;  %3418 = vst [vmem:[#allocation16_spill] sm:$0xff] %v2074_v56 }
 0x197   :  { %3419 = vst [vmem:[#allocation17_spill] sm:$0xff] %v2077_v57  ;;  %3420 = vst [vmem:[#allocation18_spill] sm:$0xff] %v2080_v58  ;;  %v273_v59 = vmax.f32 %v2071_v55, %v2077_v57  ;;  %v280_v60 = vmax.f32 %v2074_v56, %v2080_v58  ;;  %v247_v32 = vadd.f32 %v2080_v58, %v2074_v56 }
 0x198   :  { %v225_v61 = vpop.permute.xlu1 %224  ;;  %v240_v37 = vadd.f32 %v2077_v57, %v2071_v55  ;;  %v1144_v57 = vld [vmem:[#allocation5 + $0x22] ss:$8 sm:$0x3] }
 0x199   :  { %v274_v62 = vrot.slane %v273_v59, 4  ;;  %v281_v63 = vrot.slane %v280_v60, 4  ;;  %v2087_v4 = vmul.f32 %v225_v61, %v2018_v0  ;;  %v2090_v8 = vmul.f32 %v225_v61, %v2020_v1 }
 0x19a   :  { %v248_v34 = vrot.slane %v247_v32, 4  ;;  %v241_v41 = vrot.slane %v240_v37, 4 }
 0x19b   :  { %v275_v2 = vmax.f32 %v273_v59, %v274_v62  ;;  %v282_v3 = vmax.f32 %v280_v60, %v281_v63  ;;  %3421 = vst [vmem:[#allocation19_spill] sm:$0xff] %v2087_v4  ;;  %3422 = vst [vmem:[#allocation20_spill] sm:$0xff] %v2090_v8 }
 0x19c   :  { %v230_v7 = vpop.permute.xlu1 %229  ;;  %v249_v38 = vadd.f32 %v248_v34, %v247_v32  ;;  %v242_v45 = vadd.f32 %v241_v41, %v240_v37 }
 0x19d   :  { %v2093_v9 = vmul.f32 %v230_v7, %v2028_v5  ;;  %v2096_v10 = vmul.f32 %v230_v7, %v2030_v6  ;;  %v276_v11 = vrot.slane %v275_v2, 2  ;;  %v283_v12 = vrot.slane %v282_v3, 2 }
 0x19e   :  { %v250_v42 = vrot.slane %v249_v38, 2  ;;  %v243_v49 = vrot.slane %v242_v45, 2 }
 0x19f   :  { %3423 = vst [vmem:[#allocation21_spill] sm:$0xff] %v2093_v9  ;;  %3424 = vst [vmem:[#allocation22_spill] sm:$0xff] %v2096_v10  ;;  %v287_v13 = vmax.f32 %v2087_v4, %v2093_v9  ;;  %v294_v14 = vmax.f32 %v2090_v8, %v2096_v10  ;;  %v277_v16 = vmax.f32 %v275_v2, %v276_v11 }
 0x1a0   :  { %v284_v17 = vmax.f32 %v282_v3, %v283_v12  ;;  %v261_v31 = vadd.f32 %v2096_v10, %v2090_v8  ;;  %v254_v35 = vadd.f32 %v2093_v9, %v2087_v4  ;;  %v251_v46 = vadd.f32 %v250_v42, %v249_v38  ;;  %v2466_v9 = vld [vmem:[#allocation7 + $0x6] ss:$8 sm:$0x3] }
 0x1a1   :  { %v288_v15 = vrot.slane %v287_v13, 4  ;;  %v295_v0 = vrot.slane %v294_v14, 4  ;;  %v278_v20 = vrot.slane %v277_v16, 1  ;;  %v244_v53 = vadd.f32 %v243_v49, %v242_v45 }
 0x1a2   :  { %v285_v21 = vrot.slane %v284_v17, 1  ;;  %v262_v33 = vrot.slane %v261_v31, 4  ;;  %v255_v39 = vrot.slane %v254_v35, 4  ;;  %v252_v50 = vrot.slane %v251_v46, 1 }
 0x1a3   :  { %v289_v1 = vmax.f32 %v287_v13, %v288_v15  ;;  %v296_v18 = vmax.f32 %v294_v14, %v295_v0  ;;  %v279_v25 = vmax.f32 %v277_v16, %v278_v20  ;;  %v245_v61 = vrot.slane %v244_v53, 1 }
 0x1a4   :  { %v286_v26 = vmax.f32 %v284_v17, %v285_v21  ;;  %v263_v36 = vadd.f32 %v262_v33, %v261_v31  ;;  %v256_v43 = vadd.f32 %v255_v39, %v254_v35  ;;  %v253_v54 = vadd.f32 %v252_v50, %v251_v46 }
 0x1a5   :  { %v290_v19 = vrot.slane %v289_v1, 2  ;;  %v297_v5 = vrot.slane %v296_v18, 2  ;;  %v246_v3 = vadd.f32 %v245_v61, %v244_v53  ;;  %v314_v13 = vlaneseq }
 0x1a6   :  { %v264_v40 = vrot.slane %v263_v36, 2  ;;  %v257_v47 = vrot.slane %v256_v43, 2  ;;  %v270_v62 = vmul.f32 0.0625, %v253_v54 }
 0x1a7   :  { %v291_v6 = vmax.f32 %v289_v1, %v290_v19  ;;  %v298_v22 = vmax.f32 %v296_v18, %v297_v5  ;;  %v269_v11 = vmul.f32 0.0625, %v246_v3  ;;  %v2239_v14 = vand.u32 127, %v314_v13 }
 0x1a8   :  { %v265_v44 = vadd.f32 %v264_v40, %v263_v36  ;;  %v258_v51 = vadd.f32 %v257_v47, %v256_v43 }
 0x1a9   :  { %v292_v23 = vrot.slane %v291_v6, 1  ;;  %v299_v24 = vrot.slane %v298_v22, 1  ;;  %vm316_vm2 = vcmp.lt.s32.totalorder %v2239_v14, 73  ;;  %vm367_vm3 = vcmp.lt.s32.totalorder %v2239_v14, 72 }
 0x1aa   :  { %v266_v48 = vrot.slane %v265_v44, 1  ;;  %v259_v59 = vrot.slane %v258_v51, 1  ;;  %vm412_vm4 = vcmp.lt.s32.totalorder %v2239_v14, 71  ;;  %vm502_vm5 = vcmp.lt.s32.totalorder %v2239_v14, 64 }
 0x1ab   :  { %v293_v27 = vmax.f32 %v291_v6, %v292_v23  ;;  %v300_v28 = vmax.f32 %v298_v22, %v299_v24  ;;  %vm549_vm6 = vcmp.lt.s32.totalorder %v2239_v14, 63  ;;  %vm596_vm7 = vcmp.lt.s32.totalorder %v2239_v14, 57 }
 0x1ac   :  { %v267_v52 = vadd.f32 %v266_v48, %v265_v44  ;;  %v260_v63 = vadd.f32 %v259_v59, %v258_v51  ;;  %vm457_vm8 = vcmp.lt.s32.totalorder %v2239_v14, 65  ;;  %vm643_vm9 = vcmp.lt.s32.totalorder %v2239_v14, 56 }
 0x1ad   :  { %v2103_v29 = vsel %vm305_vm1, %v293_v27, %v279_v25  ;;  %v2106_v30 = vsel %vm305_vm1, %v300_v28, %v286_v26  ;;  %vm690_vm10 = vcmp.lt.s32.totalorder %v2239_v14, 55  ;;  %vm737_vm11 = vcmp.lt.s32.totalorder %v2239_v14, 9 }
 0x1ae   :  { %372 = vrot.lane.b32.xlu0 %v2106_v30, %s1890_s2  ;;  %327 = vrot.lane.b32.xlu1 %v2103_v29, %s1891_s28  ;;  %v272_v60 = vmul.f32 0.0625, %v267_v52  ;;  %v271_v7 = vmul.f32 0.0625, %v260_v63  ;;  %vm784_vm12 = vcmp.lt.s32.totalorder %v2239_v14, 8  ;;  %vm831_vm13 = vcmp.lt.s32.totalorder %v2239_v14, 7 }
 0x1af   :  { %vm878_vm14 = vcmp.lt.s32.totalorder %v2239_v14, 1  ;;  %vm959_vm15 = vcmp.lt.s32.totalorder %v2239_v14, 127  ;;  %vm1006_vm0 = vcmp.lt.s32.totalorder %v2239_v14, 121 }
 0x1b0   :  { %v2177_v2 = vsel %vm305_vm1, %v272_v60, %v270_v62  ;;  %v2188_v12 = vsel %vm305_vm1, %v271_v7, %v269_v11  ;;  %vm1053_vm1 = vcmp.lt.s32.totalorder %v2239_v14, 120 }
 0x1b2   :  { %417 = vrot.lane.b32.xlu0 %v2106_v30, %s1892_s29  ;;  %329 = vrot.lane.b32.xlu1 %v2106_v30, %s1891_s28 }
 0x1b6   :  { %507 = vrot.lane.b32.xlu0 %v2106_v30, %s1893_s30  ;;  %370 = vrot.lane.b32.xlu1 %v2103_v29, %s1890_s2 }
 0x1ba   :  { %554 = vrot.lane.b32.xlu0 %v2106_v30, %s1894_s7  ;;  %415 = vrot.lane.b32.xlu1 %v2103_v29, %s1892_s29 }
 0x1be   :  { %601 = vrot.lane.b32.xlu0 %v2106_v30, %s1895_s8  ;;  %505 = vrot.lane.b32.xlu1 %v2103_v29, %s1893_s30 }
 0x1c2   :  { %462 = vrot.lane.b32.xlu0 %v2106_v30, %s1896_s11  ;;  %552 = vrot.lane.b32.xlu1 %v2103_v29, %s1894_s7 }
 0x1c6   :  { %648 = vrot.lane.b32.xlu0 %v2106_v30, %s1897_s0  ;;  %599 = vrot.lane.b32.xlu1 %v2103_v29, %s1895_s8 }
 0x1ca   :  { %695 = vrot.lane.b32.xlu0 %v2106_v30, %s1898_s24  ;;  %460 = vrot.lane.b32.xlu1 %v2103_v29, %s1896_s11 }
 0x1ce   :  { %742 = vrot.lane.b32.xlu0 %v2106_v30, %s1899_s12  ;;  %646 = vrot.lane.b32.xlu1 %v2103_v29, %s1897_s0 }
 0x1d2   :  { %789 = vrot.lane.b32.xlu0 %v2106_v30, %s1900_s13  ;;  %693 = vrot.lane.b32.xlu1 %v2103_v29, %s1898_s24 }
 0x1d6   :  { %836 = vrot.lane.b32.xlu0 %v2106_v30, %s1901_s14  ;;  %740 = vrot.lane.b32.xlu1 %v2103_v29, %s1899_s12 }
 0x1da   :  { %883 = vrot.lane.b32.xlu0 %v2106_v30, %s1902_s15  ;;  %787 = vrot.lane.b32.xlu1 %v2103_v29, %s1900_s13 }
 0x1de   :  { %964 = vrot.lane.b32.xlu0 %v2106_v30, %s1903_s16  ;;  %834 = vrot.lane.b32.xlu1 %v2103_v29, %s1901_s14 }
 0x1e2   :  { %1011 = vrot.lane.b32.xlu0 %v2106_v30, %s1904_s17  ;;  %881 = vrot.lane.b32.xlu1 %v2103_v29, %s1902_s15 }
 0x1e6   :  { %1058 = vrot.lane.b32.xlu0 %v2106_v30, %s1905_s18  ;;  %962 = vrot.lane.b32.xlu1 %v2103_v29, %s1903_s16 }
 0x1ea   :  { %365 = vrot.lane.b32.xlu0 %v2177_v2, %s1890_s2  ;;  %1009 = vrot.lane.b32.xlu1 %v2103_v29, %s1904_s17 }
 0x1ee   :  { %410 = vrot.lane.b32.xlu0 %v2177_v2, %s1892_s29  ;;  %1056 = vrot.lane.b32.xlu1 %v2103_v29, %s1905_s18 }
 0x1f2   :  { %500 = vrot.lane.b32.xlu0 %v2177_v2, %s1893_s30  ;;  %310 = vrot.lane.b32.xlu1 %v2188_v12, %s1891_s28 }
 0x1f6   :  { %547 = vrot.lane.b32.xlu0 %v2177_v2, %s1894_s7  ;;  %312 = vrot.lane.b32.xlu1 %v2177_v2, %s1891_s28 }
 0x1fa   :  { %594 = vrot.lane.b32.xlu0 %v2177_v2, %s1895_s8  ;;  %363 = vrot.lane.b32.xlu1 %v2188_v12, %s1890_s2 }
 0x1fe   :  { %455 = vrot.lane.b32.xlu0 %v2177_v2, %s1896_s11  ;;  %408 = vrot.lane.b32.xlu1 %v2188_v12, %s1892_s29 }
 0x202   :  { %641 = vrot.lane.b32.xlu0 %v2177_v2, %s1897_s0  ;;  %498 = vrot.lane.b32.xlu1 %v2188_v12, %s1893_s30 }
 0x206   :  { %688 = vrot.lane.b32.xlu0 %v2177_v2, %s1898_s24  ;;  %545 = vrot.lane.b32.xlu1 %v2188_v12, %s1894_s7 }
 0x20a   :  { %735 = vrot.lane.b32.xlu0 %v2177_v2, %s1899_s12  ;;  %592 = vrot.lane.b32.xlu1 %v2188_v12, %s1895_s8 }
 0x20e   :  { %782 = vrot.lane.b32.xlu0 %v2177_v2, %s1900_s13  ;;  %453 = vrot.lane.b32.xlu1 %v2188_v12, %s1896_s11 }
 0x212   :  { %829 = vrot.lane.b32.xlu0 %v2177_v2, %s1901_s14  ;;  %639 = vrot.lane.b32.xlu1 %v2188_v12, %s1897_s0 }
 0x216   :  { %876 = vrot.lane.b32.xlu0 %v2177_v2, %s1902_s15  ;;  %686 = vrot.lane.b32.xlu1 %v2188_v12, %s1898_s24 }
 0x21a   :  { %957 = vrot.lane.b32.xlu0 %v2177_v2, %s1903_s16  ;;  %733 = vrot.lane.b32.xlu1 %v2188_v12, %s1899_s12 }
 0x21e   :  { %1004 = vrot.lane.b32.xlu0 %v2177_v2, %s1904_s17  ;;  %780 = vrot.lane.b32.xlu1 %v2188_v12, %s1900_s13 }
 0x220   :  { %v373_v15 = vpop.permute.xlu0 %372  ;;  %v328_v0 = vpop.permute.xlu1 %327 }
 0x222   :  { %1051 = vrot.lane.b32.xlu0 %v2177_v2, %s1905_s18  ;;  %827 = vrot.lane.b32.xlu1 %v2188_v12, %s1901_s14 }
 0x224   :  { %v418_v16 = vpop.permute.xlu0 %417  ;;  %v330_v17 = vpop.permute.xlu1 %329 }
 0x225   :  { %v2248_v1 = vsel %vm316_vm2, %v328_v0, %v330_v17  ;;  %v2252_v18 = vsel %vm316_vm2, %v330_v17, %v328_v0 }
 0x226   :  { %1098 = vrot.lane.b32.xlu0 %v2177_v2, %s1906_s19  ;;  %874 = vrot.lane.b32.xlu1 %v2188_v12, %s1902_s15 }
 0x228   :  { %v508_v19 = vpop.permute.xlu0 %507  ;;  %v371_v5 = vpop.permute.xlu1 %370 }
 0x229   :  { %v2261_v20 = vsel %vm367_vm3, %v371_v5, %v373_v15  ;;  %v2265_v21 = vsel %vm367_vm3, %v373_v15, %v371_v5  ;;  %v2371_v15 = vshrl.u32 %v314_v13, 7 }
 0x22a   :  { %1105 = vrot.lane.b32.xlu0 %v2106_v30, %s1906_s19  ;;  %955 = vrot.lane.b32.xlu1 %v2188_v12, %s1903_s16 }
 0x22b   :  { %3431 = vst [vmem:[#allocation29_spill] sm:$0xff] %v2371_v15  ;;  %v2383_v5 = vsub.s32 0, %v2371_v15 }
 0x22c   :  { %v555_v6 = vpop.permute.xlu0 %554  ;;  %v416_v22 = vpop.permute.xlu1 %415 }
 0x22d   :  { %v2274_v23 = vsel %vm412_vm4, %v416_v22, %v418_v16  ;;  %v2278_v24 = vsel %vm412_vm4, %v418_v16, %v416_v22  ;;  %v2386_v22 = vsub.s32 1, %v2371_v15 }
 0x22e   :  { %1002 = vrot.lane.b32.xlu1 %v2188_v12, %s1904_s17 }
 0x230   :  { %v602_v25 = vpop.permute.xlu0 %601  ;;  %v506_v26 = vpop.permute.xlu1 %505 }
 0x231   :  { %v2285_v27 = vsel %vm502_vm5, %v506_v26, %v508_v19  ;;  %v2289_v28 = vsel %vm502_vm5, %v508_v19, %v506_v26  ;;  %v937_v26 = vld [vmem:[#allocation7 + $0x15] ss:$8 sm:$0x3] }
 0x232   :  { %3425 = vst [vmem:[#allocation23_spill] sm:$0xff] %v2289_v28  ;;  %1049 = vrot.lane.b32.xlu1 %v2188_v12, %s1905_s18 }
 0x234   :  { %v463_v31 = vpop.permute.xlu0 %462  ;;  %v553_v32 = vpop.permute.xlu1 %552 }
 0x235   :  { %v2296_v33 = vsel %vm549_vm6, %v553_v32, %v555_v6  ;;  %v2300_v34 = vsel %vm549_vm6, %v555_v6, %v553_v32  ;;  %v922_v6 = vld [vmem:[#allocation5 + $0x15] ss:$8 sm:$0x3]  ;;  %v2390_v32 = vld [vmem:[#allocation7 + $0x22] ss:$8 sm:$0x3] }
 0x236   :  { %1096 = vrot.lane.b32.xlu1 %v2188_v12, %s1906_s19 }
 0x238   :  { %v649_v35 = vpop.permute.xlu0 %648  ;;  %v600_v36 = vpop.permute.xlu1 %599 }
 0x239   :  { %v2307_v37 = vsel %vm596_vm7, %v600_v36, %v602_v25  ;;  %v2311_v38 = vsel %vm596_vm7, %v602_v25, %v600_v36 }
 0x23a   :  { %1103 = vrot.lane.b32.xlu1 %v2103_v29, %s1906_s19 }
 0x23c   :  { %v696_v39 = vpop.permute.xlu0 %695  ;;  %v461_v40 = vpop.permute.xlu1 %460 }
 0x23d   :  { %v2318_v41 = vsel %vm457_vm8, %v461_v40, %v463_v31  ;;  %v2322_v42 = vsel %vm457_vm8, %v463_v31, %v461_v40  ;;  %v2388_v31 = vld [vmem:[#allocation7] ss:$8 sm:$0x3]  ;;  %v927_v40 = vrot.slane %v922_v6, %v2383_v5 }
 0x240   :  { %v743_v43 = vpop.permute.xlu0 %742  ;;  %v647_v44 = vpop.permute.xlu1 %646 }
 0x241   :  { %v2327_v45 = vsel %vm643_vm9, %v647_v44, %v649_v35  ;;  %v2331_v46 = vsel %vm643_vm9, %v649_v35, %v647_v44  ;;  %v942_v44 = vrot.slane %v937_v26, %v2383_v5 }
 0x242   :  { %3426 = vst [vmem:[#allocation24_spill] sm:$0xff] %v2327_v45  ;;  %3427 = vst [vmem:[#allocation25_spill] sm:$0xff] %v2331_v46 }
 0x243   :  { %v949_v8 = vmul.f32 %v942_v44, %v2103_v29  ;;  %v2482_v44 = vld [vmem:[#allocation7 + $0x3] ss:$8 sm:$0x3]  ;;  %v333_v29 = vld [vmem:[#allocation5] ss:$8 sm:$0x3] }
 0x244   :  { %v790_v47 = vpop.permute.xlu0 %789  ;;  %v694_v48 = vpop.permute.xlu1 %693 }
 0x245   :  { %v2336_v49 = vsel %vm690_vm10, %v694_v48, %v696_v39  ;;  %v2340_v50 = vsel %vm690_vm10, %v696_v39, %v694_v48  ;;  %v2400_v39 = vld [vmem:[#allocation7 + $0x1] ss:$8 sm:$0x3] }
 0x248   :  { %v837_v51 = vpop.permute.xlu0 %836  ;;  %v741_v52 = vpop.permute.xlu1 %740 }
 0x249   :  { %v2345_v53 = vsel %vm737_vm11, %v741_v52, %v743_v43  ;;  %v2349_v54 = vsel %vm737_vm11, %v743_v43, %v741_v52  ;;  %v931_v43 = vrot.slane %v922_v6, %v2386_v22  ;;  %v2412_v52 = vld [vmem:[#allocation7 + $0x23] ss:$8 sm:$0x3]  ;;  %v934_v6 = vmul.f32 %v927_v40, %v2188_v12  ;;  %v2454_v12 = vld [vmem:[#allocation7 + $0x5] ss:$8 sm:$0x3] }
 0x24a   :  { %v2456_v40 = vld [vmem:[#allocation7 + $0x27] ss:$8 sm:$0x3] }
 0x24b   :  { %3440 = vst [vmem:[#allocation38_spill] sm:$0xff] %v2456_v40 }
 0x24c   :  { %v884_v59 = vpop.permute.xlu0 %883  ;;  %v788_v60 = vpop.permute.xlu1 %787 }
 0x24d   :  { %v2354_v61 = vsel %vm784_vm12, %v788_v60, %v790_v47  ;;  %v2358_v62 = vsel %vm784_vm12, %v790_v47, %v788_v60  ;;  %v2448_v47 = vld [vmem:[#allocation7 + $0x26] ss:$8 sm:$0x3] }
 0x24e   :  { %3428 = vst [vmem:[#allocation26_spill] sm:$0xff] %v2354_v61  ;;  %3439 = vst [vmem:[#allocation37_spill] sm:$0xff] %v2448_v47 }
 0x250   :  { %v965_v63 = vpop.permute.xlu0 %964  ;;  %v835_v3 = vpop.permute.xlu1 %834 }
 0x251   :  { %v2363_v7 = vsel %vm831_vm13, %v835_v3, %v837_v51  ;;  %v2367_v11 = vsel %vm831_vm13, %v837_v51, %v835_v3  ;;  %v946_v3 = vrot.slane %v937_v26, %v2386_v22  ;;  %v2435_v26 = vld [vmem:[#allocation7 + $0x4] ss:$8 sm:$0x3] }
 0x252   :  { %3429 = vst [vmem:[#allocation27_spill] sm:$0xff] %v2363_v7  ;;  %3430 = vst [vmem:[#allocation28_spill] sm:$0xff] %v2367_v11  ;;  %v2650_v11 = vld [vmem:[#allocation5 + $0x30] ss:$8 sm:$0x3] }
 0x253   :  { %3465 = vst [vmem:[#allocation59_spill] sm:$0xff] %v2650_v11 }
 0x254   :  { %v1012_v0 = vpop.permute.xlu0 %1011  ;;  %v882_v16 = vpop.permute.xlu1 %881 }
 0x255   :  { %v2375_v17 = vsel %vm878_vm14, %v882_v16, %v884_v59  ;;  %v2379_v19 = vsel %vm878_vm14, %v884_v59, %v882_v16  ;;  %v2414_v59 = vld [vmem:[#allocation7 + $0x2] ss:$8 sm:$0x3]  ;;  %v935_v16 = vmul.f32 %v931_v43, %v2177_v2  ;;  %v2468_v2 = vld [vmem:[#allocation7 + $0x30] ss:$8 sm:$0x3] }
 0x256   :  { %3432 = vst [vmem:[#allocation30_spill] sm:$0xff] %v2375_v17  ;;  %3433 = vst [vmem:[#allocation31_spill] sm:$0xff] %v2379_v19  ;;  %v2564_v17 = vld [vmem:[#allocation7 + $0x12] ss:$8 sm:$0x3] }
 0x257   :  { %3441 = vst [vmem:[#allocation39_spill] sm:$0xff] %v2468_v2  ;;  %3453 = vst [vmem:[#allocation47_spill] sm:$0xff] %v2564_v17  ;;  %v2566_v19 = vld [vmem:[#allocation7 + $0x13] ss:$8 sm:$0x3] }
 0x258   :  { %v1059_v13 = vpop.permute.xlu0 %1058  ;;  %v963_v25 = vpop.permute.xlu1 %962  ;;  %3454 = vst [vmem:[#allocation48_spill] sm:$0xff] %v2566_v19 }
 0x259   :  { %v2394_v35 = vsel %vm959_vm15, %v963_v25, %v965_v63  ;;  %v2398_v36 = vsel %vm959_vm15, %v965_v63, %v963_v25  ;;  %v2423_v25 = vld [vmem:[#allocation7 + $0x24] ss:$8 sm:$0x3] }
 0x25a   :  { %3434 = vst [vmem:[#allocation32_spill] sm:$0xff] %v2394_v35  ;;  %3435 = vst [vmem:[#allocation33_spill] sm:$0xff] %v2398_v36  ;;  %v2548_v36 = vld [vmem:[#allocation7 + $0x11] ss:$8 sm:$0x3] }
 0x25b   :  { %3436 = vst [vmem:[#allocation34_spill] sm:$0xff] %v2423_v25  ;;  %v3469_v25 = vrot.slane %v2435_v26, %v2386_v22 }
 0x25c   :  { %v2416_v60 = vpop.permute.xlu0 %365  ;;  %v1010_v63 = vpop.permute.xlu1 %1009 }
 0x25d   :  { %v2427_v51 = vsel %vm1006_vm0, %v1010_v63, %v1012_v0  ;;  %v2431_v48 = vsel %vm1006_vm0, %v1012_v0, %v1010_v63  ;;  %v950_v0 = vmul.f32 %v946_v3, %v2106_v30  ;;  %v2484_v3 = vld [vmem:[#allocation7 + $0x25] ss:$8 sm:$0x3]  ;;  %v2488_v63 = vadd.f32 %v949_v8, %v934_v6  ;;  %v2546_v8 = vld [vmem:[#allocation7 + $0x32] ss:$8 sm:$0x3] }
 0x25e   :  { %3437 = vst [vmem:[#allocation35_spill] sm:$0xff] %v2427_v51  ;;  %3438 = vst [vmem:[#allocation36_spill] sm:$0xff] %v2431_v48  ;;  %v540_v61 = vmul.f32 %v3469_v25, %v2285_v27  ;;  %v3472_v25 = vrot.slane %v2454_v12, %v2383_v5 }
 0x25f   :  { %3444 = vst [vmem:[#allocation42_spill] sm:$0xff] %v2484_v3  ;;  %v2486_v4 = vadd.f32 %v950_v0, %v935_v16  ;;  %3446 = vst [vmem:[#allocation44_spill] sm:$0xff] %v2488_v63  ;;  %v2520_v0 = vld [vmem:[#allocation7 + $0x10] ss:$8 sm:$0x3]  ;;  %v338_v63 = vrot.slane %v333_v29, %v2383_v5 }
 0x260   :  { %v2458_v43 = vpop.permute.xlu0 %410  ;;  %v1057_v10 = vpop.permute.xlu1 %1056  ;;  %3450 = vst [vmem:[#allocation46_spill] sm:$0xff] %v2546_v8 }
 0x261   :  { %v2472_v56 = vsel %vm1053_vm1, %v1057_v10, %v1059_v13  ;;  %v2476_v58 = vsel %vm1053_vm1, %v1059_v13, %v1057_v10  ;;  %3445 = vst [vmem:[#allocation43_spill] sm:$0xff] %v2486_v4  ;;  %v2506_v10 = vld [vmem:[#allocation7 + $0x7] ss:$8 sm:$0x3]  ;;  %v342_v4 = vrot.slane %v333_v29, %v2386_v22  ;;  %v3448_v29 = vrot.slane %v2388_v31, %v2383_v5 }
 0x262   :  { %3442 = vst [vmem:[#allocation40_spill] sm:$0xff] %v2472_v56  ;;  %3443 = vst [vmem:[#allocation41_spill] sm:$0xff] %v2476_v58  ;;  %v2508_v13 = vld [vmem:[#allocation7 + $0x31] ss:$8 sm:$0x3]  ;;  %v1149_v58 = vrot.slane %v1144_v57, %v2383_v5  ;;  %v1153_v56 = vrot.slane %v1144_v57, %v2386_v22  ;;  %v3449_v57 = vrot.slane %v2388_v31, %v2386_v22 }
 0x263   :  { %3447 = vst [vmem:[#allocation45_spill] sm:$0xff] %v2508_v13  ;;  %v359_v48 = vmul.f32 %v3448_v29, %v2252_v18  ;;  %v3451_v29 = vrot.slane %v2390_v32, %v2383_v5  ;;  %v3452_v31 = vrot.slane %v2390_v32, %v2386_v22  ;;  %v2614_v32 = vld [vmem:[#allocation5 + $0x24] ss:$8 sm:$0x3] }
 0x264   :  { %v2510_v55 = vpop.permute.xlu0 %500  ;;  %v311_v30 = vpop.permute.xlu1 %310  ;;  %v360_v51 = vmul.f32 %v3449_v57, %v2248_v1  ;;  %3462 = vst [vmem:[#allocation56_spill] sm:$0xff] %v2614_v32 }
 0x265   :  { %v1171_v35 = vmul.f32 %v3451_v29, %v2248_v1  ;;  %v1172_v57 = vmul.f32 %v3452_v31, %v2252_v18  ;;  %v2578_v29 = vld [vmem:[#allocation7 + $0x16] ss:$8 sm:$0x3]  ;;  %v2624_v1 = vld [vmem:[#allocation5 + $0x26] ss:$8 sm:$0x3] }
 0x266   :  { %3456 = vst [vmem:[#allocation50_spill] sm:$0xff] %v2578_v29  ;;  %3463 = vst [vmem:[#allocation57_spill] sm:$0xff] %v2624_v1  ;;  %v2634_v29 = vld [vmem:[#allocation5 + $0x27] ss:$8 sm:$0x3] }
 0x267   :  { %3464 = vst [vmem:[#allocation58_spill] sm:$0xff] %v2634_v29 }
 0x268   :  { %v2550_v6 = vpop.permute.xlu0 %547  ;;  %v313_v13 = vpop.permute.xlu1 %312 }
 0x269   :  { %v317_v16 = vsel %vm316_vm2, %v311_v30, %v313_v13  ;;  %v318_v15 = vsel %vm316_vm2, %v313_v13, %v311_v30  ;;  %v2576_v13 = vld [vmem:[#allocation7 + $0x14] ss:$8 sm:$0x3]  ;;  %vm1100_vm2 = vcmp.lt.s32.totalorder %v2239_v14, 119 }
 0x26a   :  { %v345_v3 = vmul.f32 %v338_v63, %v318_v15  ;;  %v346_v2 = vmul.f32 %v342_v4, %v317_v16  ;;  %v1156_v40 = vmul.f32 %v1149_v58, %v317_v16  ;;  %v1157_v7 = vmul.f32 %v1153_v56, %v318_v15  ;;  %3455 = vst [vmem:[#allocation49_spill] sm:$0xff] %v2576_v13  ;;  %v2580_v63 = vld [vmem:[#allocation7 + $0x17] ss:$8 sm:$0x3] }
 0x26b   :  { %3457 = vst [vmem:[#allocation51_spill] sm:$0xff] %v2580_v63  ;;  %v2582_v58 = vld [vmem:[#allocation7 + $0x20] ss:$8 sm:$0x3] }
 0x26c   :  { %3458 = vst [vmem:[#allocation52_spill] sm:$0xff] %v2582_v58  ;;  %v2584_v56 = vadd.f32 %v359_v48, %v345_v3  ;;  %v2586_v4 = vadd.f32 %v360_v51, %v346_v2  ;;  %v2588_v15 = vadd.f32 %v1171_v35, %v1156_v40  ;;  %v2590_v16 = vadd.f32 %v1172_v57, %v1157_v7  ;;  %v2592_v31 = vpop.permute.xlu0 %594  ;;  %v364_v18 = vpop.permute.xlu1 %363  ;;  %v377_v51 = vld [vmem:[#allocation5 + $0x1] ss:$8 sm:$0x3] }
 0x26d   :  { %v2602_v35 = vld [vmem:[#allocation5 + $0x23] ss:$8 sm:$0x3]  ;;  %v2612_v57 = vld [vmem:[#allocation5 + $0x2] ss:$8 sm:$0x3]  ;;  %v382_v3 = vrot.slane %v377_v51, %v2383_v5  ;;  %v2666_v19 = vsel %vm367_vm3, %v2416_v60, %v364_v18 }
 0x26e   :  { %3459 = vst [vmem:[#allocation53_spill] sm:$0xff] %v2588_v15  ;;  %3460 = vst [vmem:[#allocation54_spill] sm:$0xff] %v2590_v16  ;;  %v512_v40 = vld [vmem:[#allocation5 + $0x4] ss:$8 sm:$0x3]  ;;  %v386_v16 = vrot.slane %v377_v51, %v2386_v22  ;;  %v427_v2 = vrot.slane %v2612_v57, %v2383_v5  ;;  %v431_v58 = vrot.slane %v2612_v57, %v2386_v22 }
 0x26f   :  { %3461 = vst [vmem:[#allocation55_spill] sm:$0xff] %v2602_v35  ;;  %v559_v7 = vld [vmem:[#allocation5 + $0x5] ss:$8 sm:$0x3]  ;;  %v517_v48 = vrot.slane %v512_v40, %v2383_v5  ;;  %v521_v35 = vrot.slane %v512_v40, %v2386_v22  ;;  %v2661_v40 = vsel %vm367_vm3, %v364_v18, %v2416_v60  ;;  %v3471_v18 = vrot.slane %v2400_v39, %v2386_v22 }
 0x270   :  { %v2632_v30 = vpop.permute.xlu0 %455  ;;  %v409_v63 = vpop.permute.xlu1 %408  ;;  %v606_v13 = vld [vmem:[#allocation5 + $0x6] ss:$8 sm:$0x3]  ;;  %v564_v57 = vrot.slane %v559_v7, %v2383_v5  ;;  %v568_v51 = vrot.slane %v559_v7, %v2386_v22 }
 0x271   :  { %v611_v7 = vrot.slane %v606_v13, %v2383_v5  ;;  %v615_v15 = vrot.slane %v606_v13, %v2386_v22  ;;  %v3468_v13 = vrot.slane %v2435_v26, %v2383_v5  ;;  %v405_v11 = vmul.f32 %v3471_v18, %v2261_v20 }
 0x272   :  { %v586_v26 = vmul.f32 %v3472_v25, %v2300_v34 }
 0x273   :  { %v539_v47 = vmul.f32 %v3468_v13, %v2289_v28  ;;  %v389_v13 = vmul.f32 %v382_v3, %v2666_v19  ;;  %v390_v28 = vmul.f32 %v386_v16, %v2661_v40  ;;  %v2719_v3 = vsel %vm412_vm4, %v409_v63, %v2458_v43 }
 0x274   :  { %v2668_v8 = vpop.permute.xlu0 %641  ;;  %v499_v1 = vpop.permute.xlu1 %498  ;;  %v2724_v16 = vsel %vm412_vm4, %v2458_v43, %v409_v63  ;;  %v3476_v63 = vrot.slane %v2414_v59, %v2383_v5 }
 0x275   :  { %v2675_v32 = vsel %vm502_vm5, %v499_v1, %v2510_v55  ;;  %v2680_v29 = vsel %vm502_vm5, %v2510_v55, %v499_v1  ;;  %v3470_v1 = vrot.slane %v2400_v39, %v2383_v5 }
 0x276   :  { %3466 = vst [vmem:[#allocation60_spill] sm:$0xff] %v2675_v32  ;;  %3467 = vst [vmem:[#allocation61_spill] sm:$0xff] %v2680_v29  ;;  %v524_v17 = vmul.f32 %v517_v48, %v2680_v29  ;;  %v525_v55 = vmul.f32 %v521_v35, %v2675_v32  ;;  %v3473_v48 = vrot.slane %v2454_v12, %v2386_v22 }
 0x277   :  { %v404_v60 = vmul.f32 %v3470_v1, %v2265_v21 }
 0x278   :  { %v587_v35 = vmul.f32 %v3473_v48, %v2296_v33  ;;  %v541_v1 = vadd.f32 %v539_v47, %v524_v17  ;;  %v542_v29 = vadd.f32 %v540_v61, %v525_v55  ;;  %v2714_v32 = vpop.permute.xlu0 %688  ;;  %v546_v39 = vpop.permute.xlu1 %545  ;;  %v449_v55 = vmul.f32 %v3476_v63, %v2278_v24 }
 0x279   :  { %v2729_v12 = vsel %vm549_vm6, %v546_v39, %v2550_v6  ;;  %v2734_v61 = vsel %vm549_vm6, %v2550_v6, %v546_v39  ;;  %v3477_v6 = vrot.slane %v2414_v59, %v2386_v22  ;;  %v406_v48 = vadd.f32 %v404_v60, %v389_v13 }
 0x27a   :  { %3474 = vst [vmem:[#allocation62_spill] sm:$0xff] %v2729_v12  ;;  %3475 = vst [vmem:[#allocation63_spill] sm:$0xff] %v2734_v61  ;;  %v2737_v17 = vadd.f32 %v541_v1, %v2584_v56  ;;  %v2740_v47 = vadd.f32 %v542_v29, %v2586_v4  ;;  %v571_v18 = vmul.f32 %v564_v57, %v2734_v61  ;;  %v2754_v61 = vld [vmem:[#allocation5 + $0x25] ss:$8 sm:$0x3] }
 0x27b   :  { %v572_v43 = vmul.f32 %v568_v51, %v2729_v12  ;;  %v450_v25 = vmul.f32 %v3477_v6, %v2274_v23  ;;  %v407_v56 = vadd.f32 %v405_v11, %v390_v28  ;;  %v434_v1 = vmul.f32 %v427_v2, %v2724_v16  ;;  %v467_v51 = vld [vmem:[#allocation5 + $0x3] ss:$8 sm:$0x3]  ;;  %3478 = vst [vmem:[#allocation64_spill] sm:$0xff] %v2754_v61 }
 0x27c   :  { %v435_v29 = vmul.f32 %v431_v58, %v2719_v3  ;;  %v588_v4 = vadd.f32 %v586_v26, %v571_v18  ;;  %v593_v39 = vpop.permute.xlu1 %592  ;;  %v3479_v63 = vrot.slane %v2466_v9, %v2383_v5  ;;  %v3480_v59 = vrot.slane %v2466_v9, %v2386_v22  ;;  %v2764_v11 = vpop.permute.xlu0 %735 }
 0x27d   :  { %v589_v57 = vadd.f32 %v587_v35, %v572_v43  ;;  %v2769_v58 = vsel %vm596_vm7, %v593_v39, %v2592_v31  ;;  %v2774_v2 = vsel %vm596_vm7, %v2592_v31, %v593_v39  ;;  %v653_v35 = vld [vmem:[#allocation5 + $0x7] ss:$8 sm:$0x3]  ;;  %v472_v18 = vrot.slane %v467_v51, %v2383_v5  ;;  %v2788_v39 = vld [vmem:[#allocation5 + $0x31] ss:$8 sm:$0x3] }
 0x27e   :  { %v633_v12 = vmul.f32 %v3479_v63, %v2311_v38  ;;  %v634_v28 = vmul.f32 %v3480_v59, %v2307_v37  ;;  %3481 = vst [vmem:[#allocation65_spill] sm:$0xff] %v2774_v2  ;;  %v2776_v60 = vadd.f32 %v588_v4, %v406_v48  ;;  %v618_v26 = vmul.f32 %v611_v7, %v2774_v2  ;;  %v700_v63 = vld [vmem:[#allocation5 + $0x10] ss:$8 sm:$0x3] }
 0x27f   :  { %v2778_v13 = vadd.f32 %v589_v57, %v407_v56  ;;  %v619_v9 = vmul.f32 %v615_v15, %v2769_v58  ;;  %v476_v43 = vrot.slane %v467_v51, %v2386_v22  ;;  %3482 = vst [vmem:[#allocation66_spill] sm:$0xff] %v2788_v39  ;;  %v451_v48 = vadd.f32 %v449_v55, %v434_v1  ;;  %v2790_v15 = vld [vmem:[#allocation5 + $0x32] ss:$8 sm:$0x3] }
 0x280   :  { %v452_v56 = vadd.f32 %v450_v25, %v435_v29  ;;  %v635_v4 = vadd.f32 %v633_v12, %v618_v26  ;;  %v454_v7 = vpop.permute.xlu1 %453  ;;  %v658_v31 = vrot.slane %v653_v35, %v2383_v5  ;;  %v662_v55 = vrot.slane %v653_v35, %v2386_v22  ;;  %v2804_v12 = vld [vmem:[#allocation5 + $0x11] ss:$8 sm:$0x3]  ;;  %v2814_v26 = vpop.permute.xlu0 %782  ;;  %v2828_v29 = vld [vmem:[#allocation5 + $0x12] ss:$8 sm:$0x3] }
 0x281   :  { %v636_v57 = vadd.f32 %v634_v28, %v619_v9  ;;  %v2795_v51 = vsel %vm457_vm8, %v454_v7, %v2632_v30  ;;  %v2800_v59 = vsel %vm457_vm8, %v2632_v30, %v454_v7  ;;  %v705_v30 = vrot.slane %v700_v63, %v2383_v5 }
 0x282   :  { %3483 = vst [vmem:[#allocation67_spill] sm:$0xff] %v2795_v51  ;;  %3484 = vst [vmem:[#allocation68_spill] sm:$0xff] %v2800_v59  ;;  %v2806_v25 = vadd.f32 %v635_v4, %v451_v48  ;;  %v709_v9 = vrot.slane %v700_v63, %v2386_v22  ;;  %v480_v4 = vmul.f32 %v476_v43, %v2795_v51  ;;  %v2830_v63 = vld [vmem:[#allocation5 + $0x13] ss:$8 sm:$0x3] }
 0x283   :  { %v2808_v1 = vadd.f32 %v636_v57, %v452_v56  ;;  %v479_v56 = vmul.f32 %v472_v18, %v2800_v59  ;;  %v752_v7 = vrot.slane %v2804_v12, %v2383_v5  ;;  %v756_v28 = vrot.slane %v2804_v12, %v2386_v22 }
 0x284   :  { %v640_v57 = vpop.permute.xlu1 %639  ;;  %v3485_v6 = vrot.slane %v2482_v44, %v2383_v5  ;;  %v3486_v18 = vrot.slane %v2482_v44, %v2386_v22  ;;  %v3489_v39 = vrot.slane %v2506_v10, %v2383_v5  ;;  %v3490_v44 = vrot.slane %v2506_v10, %v2386_v22 }
 0x285   :  { %v2843_v35 = vsel %vm643_vm9, %v640_v57, %v2668_v8  ;;  %v2848_v12 = vsel %vm643_vm9, %v2668_v8, %v640_v57  ;;  %v799_v51 = vrot.slane %v2828_v29, %v2383_v5  ;;  %v803_v8 = vrot.slane %v2828_v29, %v2386_v22 }
 0x286   :  { %v494_v48 = vmul.f32 %v3485_v6, %v2322_v42  ;;  %v495_v43 = vmul.f32 %v3486_v18, %v2318_v41  ;;  %3487 = vst [vmem:[#allocation69_spill] sm:$0xff] %v2843_v35  ;;  %3488 = vst [vmem:[#allocation70_spill] sm:$0xff] %v2848_v12  ;;  %v680_v6 = vmul.f32 %v3489_v39, %v2331_v46  ;;  %v830_v39 = vpop.permute.xlu0 %829 }
 0x287   :  { %v681_v18 = vmul.f32 %v3490_v44, %v2327_v45  ;;  %v665_v59 = vmul.f32 %v658_v31, %v2848_v12  ;;  %v666_v61 = vmul.f32 %v662_v55, %v2843_v35  ;;  %v2868_v31 = vld [vmem:[#allocation5 + $0x14] ss:$8 sm:$0x3]  ;;  %v2870_v55 = vld [vmem:[#allocation5 + $0x16] ss:$8 sm:$0x3]  ;;  %v3491_v12 = vrot.slane %v2520_v0, %v2383_v5 }
 0x288   :  { %v496_v46 = vadd.f32 %v494_v48, %v479_v56  ;;  %v497_v2 = vadd.f32 %v495_v43, %v480_v4  ;;  %v687_v45 = vpop.permute.xlu1 %686  ;;  %v3492_v57 = vrot.slane %v2520_v0, %v2386_v22  ;;  %v2890_v48 = vld [vmem:[#allocation5 + $0x17] ss:$8 sm:$0x3] }
 0x289   :  { %v682_v10 = vadd.f32 %v680_v6, %v665_v59  ;;  %v683_v44 = vadd.f32 %v681_v18, %v666_v61  ;;  %v727_v29 = vmul.f32 %v3491_v12, %v2340_v50  ;;  %v2883_v61 = vsel %vm690_vm10, %v687_v45, %v2714_v32 }
 0x28a   :  { %v728_v35 = vmul.f32 %v3492_v57, %v2336_v49  ;;  %v2888_v59 = vsel %vm690_vm10, %v2714_v32, %v687_v45  ;;  %v713_v43 = vmul.f32 %v709_v9, %v2883_v61  ;;  %v893_v12 = vrot.slane %v2868_v31, %v2383_v5  ;;  %v2910_v57 = vld [vmem:[#allocation5 + $0x20] ss:$8 sm:$0x3] }
 0x28b   :  { %v2892_v56 = vadd.f32 %v682_v10, %v496_v46  ;;  %v2894_v4 = vadd.f32 %v683_v44, %v497_v2  ;;  %v712_v0 = vmul.f32 %v705_v30, %v2888_v59  ;;  %v897_v6 = vrot.slane %v2868_v31, %v2386_v22 }
 0x28c   :  { %v730_v18 = vadd.f32 %v728_v35, %v713_v43  ;;  %v734_v2 = vpop.permute.xlu1 %733  ;;  %v3493_v10 = vrot.slane %v2548_v36, %v2383_v5  ;;  %v3494_v32 = vrot.slane %v2548_v36, %v2386_v22  ;;  %v2926_v43 = vld [vmem:[#allocation5 + $0x21] ss:$8 sm:$0x3] }
 0x28d   :  { %v729_v46 = vadd.f32 %v727_v29, %v712_v0  ;;  %v738_v35 = vsel %vm737_vm11, %v734_v2, %v2764_v11  ;;  %v739_v0 = vsel %vm737_vm11, %v2764_v11, %v734_v2  ;;  %v3496_v11 = vrot.slane %v2412_v52, %v2386_v22  ;;  %v877_v2 = vpop.permute.xlu0 %876 }
 0x28e   :  { %v774_v44 = vmul.f32 %v3493_v10, %v2349_v54  ;;  %v775_v29 = vmul.f32 %v3494_v32, %v2345_v53  ;;  %v2932_v54 = vadd.f32 %v730_v18, %v2740_v47  ;;  %v759_v10 = vmul.f32 %v752_v7, %v739_v0 }
 0x28f   :  { %v2929_v9 = vadd.f32 %v729_v46, %v2737_v17  ;;  %v760_v30 = vmul.f32 %v756_v28, %v738_v35  ;;  %v3495_v53 = vrot.slane %v2412_v52, %v2383_v5  ;;  %v2944_v32 = vmul.f32 %v3496_v11, %v2265_v21  ;;  %v2954_v35 = vld [vmem:[#allocation7 + $0x21] ss:$8 sm:$0x3] }
 0x290   :  { %v776_v28 = vadd.f32 %v774_v44, %v759_v10  ;;  %v781_v46 = vpop.permute.xlu1 %780  ;;  %v3497_v21 = vld [vmem:[#allocation47_spill] sm:$0xff] }
 0x291   :  { %v2938_v36 = vmul.f32 %v3495_v53, %v2261_v20  ;;  %v777_v7 = vadd.f32 %v775_v29, %v760_v30  ;;  %v3498_v52 = vrot.slane %v3497_v21, %v2383_v5  ;;  %v3499_v53 = vld [vmem:[#allocation26_spill] sm:$0xff]  ;;  %v3500_v11 = vrot.slane %v3497_v21, %v2386_v22  ;;  %v958_v45 = vpop.permute.xlu0 %957 }
 0x292   :  { %v785_v30 = vsel %vm784_vm12, %v781_v46, %v2814_v26  ;;  %v786_v29 = vsel %vm784_vm12, %v2814_v26, %v781_v46  ;;  %v2971_v10 = vadd.f32 %v776_v28, %v2776_v60  ;;  %v3501_v20 = vld [vmem:[#allocation34_spill] sm:$0xff]  ;;  %v3506_v28 = vld [vmem:[#allocation23_spill] sm:$0xff] }
 0x293   :  { %v821_v0 = vmul.f32 %v3498_v52, %v2358_v62  ;;  %v822_v44 = vmul.f32 %v3500_v11, %v3499_v53  ;;  %v2974_v18 = vadd.f32 %v777_v7, %v2778_v13  ;;  %v806_v62 = vmul.f32 %v799_v51, %v786_v29  ;;  %v3504_v51 = vld [vmem:[#allocation37_spill] sm:$0xff]  ;;  %v3509_v29 = vld [vmem:[#allocation48_spill] sm:$0xff]  ;;  %v3511_v60 = vld [vmem:[#allocation27_spill] sm:$0xff] }
 0x294   :  { %v807_v52 = vmul.f32 %v803_v8, %v785_v30  ;;  %v3502_v21 = vrot.slane %v3501_v20, %v2383_v5  ;;  %v3503_v11 = vrot.slane %v3501_v20, %v2386_v22  ;;  %v3505_v26 = vrot.slane %v3504_v51, %v2383_v5  ;;  %v3508_v30 = vld [vmem:[#allocation28_spill] sm:$0xff] }
 0x295   :  { %v823_v46 = vadd.f32 %v821_v0, %v806_v62  ;;  %v3512_v13 = vrot.slane %v3509_v29, %v2386_v22  ;;  %v3513_v62 = vrot.slane %v2830_v63, %v2383_v5 }
 0x296   :  { %v2980_v53 = vmul.f32 %v3502_v21, %v2274_v23  ;;  %v2986_v47 = vmul.f32 %v3503_v11, %v2278_v24  ;;  %v1307_v8 = vmul.f32 %v3505_v26, %v2285_v27  ;;  %v3507_v23 = vrot.slane %v3504_v51, %v2386_v22  ;;  %v828_v24 = vpop.permute.xlu1 %827 }
 0x297   :  { %v824_v20 = vadd.f32 %v822_v44, %v807_v52  ;;  %v3510_v21 = vrot.slane %v3509_v29, %v2383_v5  ;;  %v869_v17 = vmul.f32 %v3512_v13, %v3511_v60  ;;  %v832_v27 = vsel %vm831_vm13, %v828_v24, %v830_v39  ;;  %v3515_v60 = vld [vmem:[#allocation38_spill] sm:$0xff] }
 0x298   :  { %v1308_v7 = vmul.f32 %v3507_v23, %v3506_v28  ;;  %v833_v51 = vsel %vm831_vm13, %v830_v39, %v828_v24  ;;  %v825_v0 = vadd.f32 %v823_v46, %v2806_v25  ;;  %v3514_v26 = vrot.slane %v2830_v63, %v2386_v22 }
 0x299   :  { %v868_v11 = vmul.f32 %v3510_v21, %v3508_v30  ;;  %v826_v44 = vadd.f32 %v824_v20, %v2808_v1  ;;  %v853_v52 = vmul.f32 %v3513_v62, %v833_v51  ;;  %v3516_v13 = vrot.slane %v3515_v60, %v2383_v5  ;;  %v3518_v1 = vld [vmem:[#allocation39_spill] sm:$0xff]  ;;  %v3525_v51 = vld [vmem:[#allocation46_spill] sm:$0xff] }
 0x29a   :  { %v854_v28 = vmul.f32 %v3514_v26, %v832_v27  ;;  %v3517_v25 = vrot.slane %v3515_v60, %v2386_v22  ;;  %v3519_v46 = vrot.slane %v3518_v1, %v2383_v5  ;;  %v3520_v63 = vrot.slane %v3518_v1, %v2386_v22 }
 0x29b   :  { %v3024_v23 = vmul.f32 %v3516_v13, %v2296_v33  ;;  %v3521_v33 = vld [vmem:[#allocation42_spill] sm:$0xff]  ;;  %v3526_v62 = vrot.slane %v3525_v51, %v2383_v5  ;;  %v3527_v26 = vrot.slane %v3525_v51, %v2386_v22  ;;  %v3529_v13 = vld [vmem:[#allocation49_spill] sm:$0xff] }
 0x29c   :  { %v3030_v39 = vmul.f32 %v3517_v25, %v2300_v34  ;;  %v3036_v20 = vmul.f32 %v3519_v46, %v2307_v37  ;;  %v3042_v24 = vmul.f32 %v3520_v63, %v2311_v38  ;;  %v3522_v30 = vrot.slane %v3521_v33, %v2383_v5  ;;  %v3531_v46 = vld [vmem:[#allocation30_spill] sm:$0xff]  ;;  %v3533_v63 = vld [vmem:[#allocation32_spill] sm:$0xff]  ;;  %v3536_v51 = vld [vmem:[#allocation33_spill] sm:$0xff] }
 0x29d   :  { %v3523_v34 = vrot.slane %v3521_v33, %v2386_v22  ;;  %v870_v37 = vadd.f32 %v868_v11, %v853_v52  ;;  %v871_v27 = vadd.f32 %v869_v17, %v854_v28  ;;  %v1443_v38 = vmul.f32 %v3526_v62, %v2336_v49  ;;  %v875_v11 = vpop.permute.xlu1 %874  ;;  %v3534_v33 = vld [vmem:[#allocation50_spill] sm:$0xff] }
 0x29e   :  { %v3048_v29 = vmul.f32 %v3522_v30, %v2318_v41  ;;  %v1444_v60 = vmul.f32 %v3527_v26, %v2340_v50  ;;  %v3528_v41 = vld [vmem:[#allocation31_spill] sm:$0xff]  ;;  %v3530_v25 = vrot.slane %v3529_v13, %v2383_v5  ;;  %v879_v28 = vsel %vm878_vm14, %v875_v11, %v877_v2 }
 0x29f   :  { %v3054_v21 = vmul.f32 %v3523_v34, %v2322_v42  ;;  %v3532_v42 = vrot.slane %v3529_v13, %v2386_v22  ;;  %v872_v52 = vadd.f32 %v870_v37, %v2892_v56  ;;  %v873_v49 = vadd.f32 %v871_v27, %v2894_v4  ;;  %v3539_v37 = vld [vmem:[#allocation51_spill] sm:$0xff] }
 0x2a0   :  { %v915_v1 = vmul.f32 %v3530_v25, %v3528_v41  ;;  %v880_v50 = vsel %vm878_vm14, %v877_v2, %v875_v11  ;;  %v3535_v30 = vrot.slane %v3534_v33, %v2383_v5  ;;  %v3537_v62 = vrot.slane %v3534_v33, %v2386_v22  ;;  %v1005_v41 = vpop.permute.xlu0 %1004  ;;  %v3538_v2 = vld [vmem:[#allocation35_spill] sm:$0xff]  ;;  %v3541_v25 = vld [vmem:[#allocation36_spill] sm:$0xff] }
 0x2a1   :  { %3524 = vst [vmem:[#allocation47_spill] sm:$0xff] %v3054_v21  ;;  %v916_v17 = vmul.f32 %v3532_v42, %v3531_v46  ;;  %v900_v56 = vmul.f32 %v893_v12, %v880_v50  ;;  %v901_v4 = vmul.f32 %v897_v6, %v879_v28  ;;  %v3540_v27 = vrot.slane %v3539_v37, %v2383_v5  ;;  %v3543_v11 = vld [vmem:[#allocation55_spill] sm:$0xff]  ;;  %v3546_v6 = vld [vmem:[#allocation60_spill] sm:$0xff]  ;;  %v3547_v28 = vld [vmem:[#allocation57_spill] sm:$0xff] }
 0x2a2   :  { %v996_v34 = vmul.f32 %v3535_v30, %v3533_v63  ;;  %v997_v26 = vmul.f32 %v3537_v62, %v3536_v51  ;;  %v3542_v46 = vrot.slane %v3539_v37, %v2386_v22  ;;  %v3544_v63 = vrot.slane %v3543_v11, %v2383_v5  ;;  %v3549_v51 = vld [vmem:[#allocation61_spill] sm:$0xff] }
 0x2a3   :  { %v1043_v13 = vmul.f32 %v3540_v27, %v3538_v2  ;;  %v3545_v31 = vrot.slane %v3543_v11, %v2386_v22  ;;  %v3548_v50 = vrot.slane %v3547_v28, %v2383_v5  ;;  %v3550_v62 = vrot.slane %v3547_v28, %v2386_v22  ;;  %v3554_v11 = vld [vmem:[#allocation41_spill] sm:$0xff] }
 0x2a4   :  { %v1044_v42 = vmul.f32 %v3542_v46, %v3541_v25  ;;  %v1190_v33 = vmul.f32 %v3544_v63, %v2661_v40  ;;  %v917_v37 = vadd.f32 %v915_v1, %v900_v56  ;;  %v918_v27 = vadd.f32 %v916_v17, %v901_v4  ;;  %v956_v25 = vpop.permute.xlu1 %955  ;;  %v3551_v46 = vld [vmem:[#allocation40_spill] sm:$0xff] }
 0x2a5   :  { %v1191_v12 = vmul.f32 %v3545_v31, %v2666_v19  ;;  %v1292_v30 = vmul.f32 %v3548_v50, %v3546_v6  ;;  %v1293_v2 = vmul.f32 %v3550_v62, %v3549_v51  ;;  %v3552_v40 = vld [vmem:[#allocation52_spill] sm:$0xff]  ;;  %v960_v6 = vsel %vm959_vm15, %v956_v25, %v958_v45 }
 0x2a6   :  { %v3553_v63 = vrot.slane %v3552_v40, %v2383_v5  ;;  %v3555_v19 = vrot.slane %v3552_v40, %v2386_v22  ;;  %v961_v28 = vsel %vm959_vm15, %v958_v45, %v956_v25  ;;  %v919_v1 = vadd.f32 %v917_v37, %v2929_v9  ;;  %v3558_v40 = vld [vmem:[#allocation56_spill] sm:$0xff] }
 0x2a7   :  { %v920_v17 = vadd.f32 %v918_v27, %v2932_v54  ;;  %v3556_v56 = vrot.slane %v2870_v55, %v2383_v5  ;;  %v3557_v50 = vrot.slane %v2870_v55, %v2386_v22  ;;  %v1207_v62 = vadd.f32 %v2938_v36, %v1190_v33 }
 0x2a8   :  { %v1090_v21 = vmul.f32 %v3553_v63, %v3551_v46  ;;  %v1091_v31 = vmul.f32 %v3555_v19, %v3554_v11  ;;  %v1208_v46 = vadd.f32 %v2944_v32, %v1191_v12  ;;  %v3559_v45 = vrot.slane %v3558_v40, %v2383_v5  ;;  %v1052_v63 = vpop.permute.xlu0 %1051  ;;  %v1003_v19 = vpop.permute.xlu1 %1002 }
 0x2a9   :  { %v981_v4 = vmul.f32 %v3556_v56, %v960_v6  ;;  %v982_v51 = vmul.f32 %v3557_v50, %v961_v28  ;;  %v3560_v9 = vrot.slane %v3558_v40, %v2386_v22  ;;  %v1309_v37 = vadd.f32 %v1307_v8, %v1292_v30  ;;  %v3566_v6 = vld [vmem:[#allocation58_spill] sm:$0xff]  ;;  %v3568_v28 = vld [vmem:[#allocation63_spill] sm:$0xff]  ;;  %v3572_v50 = vld [vmem:[#allocation65_spill] sm:$0xff] }
 0x2aa   :  { %v1224_v25 = vmul.f32 %v3559_v45, %v2719_v3  ;;  %v1310_v27 = vadd.f32 %v1308_v7, %v1293_v2  ;;  %v3561_v36 = vrot.slane %v2790_v15, %v2383_v5  ;;  %v3562_v3 = vrot.slane %v2790_v15, %v2386_v22  ;;  %v3565_v2 = vld [vmem:[#allocation62_spill] sm:$0xff]  ;;  %v3574_v40 = vld [vmem:[#allocation53_spill] sm:$0xff] }
 0x2ab   :  { %v1225_v54 = vmul.f32 %v3560_v9, %v2724_v16  ;;  %v998_v11 = vadd.f32 %v996_v34, %v981_v4  ;;  %v999_v55 = vadd.f32 %v997_v26, %v982_v51  ;;  %v1007_v16 = vsel %vm1006_vm0, %v1003_v19, %v1005_v41  ;;  %v3575_v9 = vld [vmem:[#allocation54_spill] sm:$0xff] }
 0x2ac   :  { %v1428_v32 = vmul.f32 %v3561_v36, %v2883_v61  ;;  %v1429_v33 = vmul.f32 %v3562_v3, %v2888_v59  ;;  %v1008_v8 = vsel %vm1006_vm0, %v1005_v41, %v1003_v19  ;;  %v3563_v26 = vrot.slane %v2890_v48, %v2383_v5  ;;  %v1050_v36 = vpop.permute.xlu1 %1049 }
 0x2ad   :  { %v1000_v7 = vadd.f32 %v998_v11, %v825_v0  ;;  %v1001_v34 = vadd.f32 %v999_v55, %v826_v44  ;;  %v3564_v61 = vrot.slane %v2890_v48, %v2386_v22  ;;  %v3567_v15 = vrot.slane %v3566_v6, %v2383_v5  ;;  %v3570_v0 = vld [vmem:[#allocation59_spill] sm:$0xff] }
 0x2ae   :  { %v1028_v12 = vmul.f32 %v3563_v26, %v1007_v16  ;;  %v3569_v56 = vrot.slane %v3566_v6, %v2386_v22  ;;  %v3571_v44 = vrot.slane %v3570_v0, %v2383_v5  ;;  %v3573_v48 = vrot.slane %v3570_v0, %v2386_v22  ;;  %v1099_v26 = vpop.permute.xlu0 %1098 }
 0x2af   :  { %v1029_v30 = vmul.f32 %v3564_v61, %v1008_v8  ;;  %v1326_v59 = vmul.f32 %v3567_v15, %v3565_v2  ;;  %v1175_v45 = vadd.f32 %v3574_v40, %v1000_v7  ;;  %v1176_v11 = vadd.f32 %v3575_v9, %v1001_v34 }
 0x2b0   :  { %v1327_v41 = vmul.f32 %v3569_v56, %v3568_v28  ;;  %v1360_v4 = vmul.f32 %v3571_v44, %v2769_v58  ;;  %v1361_v51 = vmul.f32 %v3573_v48, %v3572_v50  ;;  %v1045_v55 = vadd.f32 %v1043_v13, %v1028_v12 }
 0x2b1   :  { %v1046_v19 = vadd.f32 %v1044_v42, %v1029_v30  ;;  %v1445_v3 = vadd.f32 %v1443_v38, %v1428_v32  ;;  %v1446_v16 = vadd.f32 %v1444_v60, %v1429_v33  ;;  %v1054_v8 = vsel %vm1053_vm1, %v1050_v36, %v1052_v63 }
 0x2b2   :  { %v1055_v58 = vsel %vm1053_vm1, %v1052_v63, %v1050_v36  ;;  %v1311_v61 = vadd.f32 %v1309_v37, %v1175_v45  ;;  %v1312_v2 = vadd.f32 %v1310_v27, %v1176_v11  ;;  %v1047_v6 = vadd.f32 %v1045_v55, %v872_v52  ;;  %v1097_v37 = vpop.permute.xlu1 %1096  ;;  %v3587_v36 = vld [vmem:[#allocation69_spill] sm:$0xff] }
 0x2b3   :  { %v1048_v15 = vadd.f32 %v1046_v19, %v873_v49  ;;  %v1343_v7 = vadd.f32 %v3024_v23, %v1326_v59  ;;  %v1344_v34 = vadd.f32 %v3030_v39, %v1327_v41  ;;  %v3576_v13 = vrot.slane %v2910_v57, %v2383_v5 }
 0x2b4   :  { %v3577_v60 = vrot.slane %v2910_v57, %v2386_v22  ;;  %v1447_v32 = vadd.f32 %v1445_v3, %v1311_v61  ;;  %v1448_v33 = vadd.f32 %v1446_v16, %v1312_v2  ;;  %v1209_v63 = vadd.f32 %v1207_v62, %v1047_v6  ;;  %v3588_v3 = vld [vmem:[#allocation66_spill] sm:$0xff]  ;;  %v3592_v6 = vld [vmem:[#allocation43_spill] sm:$0xff] }
 0x2b5   :  { %v1075_v38 = vmul.f32 %v3576_v13, %v1054_v8  ;;  %v1210_v12 = vadd.f32 %v1208_v46, %v1048_v15  ;;  %v1241_v52 = vadd.f32 %v2980_v53, %v1224_v25  ;;  %v1242_v49 = vadd.f32 %v2986_v47, %v1225_v54  ;;  %v3578_v46 = vld [vmem:[#allocation67_spill] sm:$0xff]  ;;  %v3579_v53 = vld [vmem:[#allocation64_spill] sm:$0xff]  ;;  %v1106_v25 = vpop.permute.xlu0 %1105 }
 0x2b6   :  { %v1076_v42 = vmul.f32 %v3577_v60, %v1055_v58  ;;  %v1377_v39 = vadd.f32 %v3036_v20, %v1360_v4  ;;  %v1378_v30 = vadd.f32 %v3042_v24, %v1361_v51  ;;  %v1345_v59 = vadd.f32 %v1343_v7, %v1209_v63  ;;  %v3590_v58 = vld [vmem:[#allocation70_spill] sm:$0xff]  ;;  %v3593_v7 = vld [vmem:[#allocation44_spill] sm:$0xff]  ;;  %v3595_v60 = vld [vmem:[#allocation45_spill] sm:$0xff] }
 0x2b7   :  { %v1092_v23 = vadd.f32 %v1090_v21, %v1075_v38  ;;  %v1346_v28 = vadd.f32 %v1344_v34, %v1210_v12  ;;  %v1101_v41 = vsel %vm1100_vm2, %v1097_v37, %v1099_v26  ;;  %v1102_v62 = vsel %vm1100_vm2, %v1099_v26, %v1097_v37  ;;  %v3594_v38 = vld [vmem:[#allocation24_spill] sm:$0xff] }
 0x2b8   :  { %v1093_v27 = vadd.f32 %v1091_v31, %v1076_v42  ;;  %v3580_v47 = vrot.slane %v3579_v53, %v2383_v5  ;;  %v3581_v31 = vld [vmem:[#allocation68_spill] sm:$0xff]  ;;  %v3582_v20 = vrot.slane %v3579_v53, %v2386_v22  ;;  %v1451_v54 = vadd.f32 %v1447_v32, %v1345_v59 }
 0x2b9   :  { %v1094_v56 = vadd.f32 %v1092_v23, %v919_v1  ;;  %v1452_v1 = vadd.f32 %v1448_v33, %v1346_v28  ;;  %v3583_v48 = vrot.slane %v2926_v43, %v2383_v5  ;;  %v3584_v40 = vrot.slane %v2926_v43, %v2386_v22  ;;  %v3597_v33 = vld [vmem:[#allocation25_spill] sm:$0xff] }
 0x2ba   :  { %v1095_v57 = vadd.f32 %v1093_v27, %v920_v17  ;;  %v1258_v21 = vmul.f32 %v3580_v47, %v3578_v46  ;;  %v1259_v24 = vmul.f32 %v3582_v20, %v3581_v31  ;;  %v1104_v17 = vpop.permute.xlu1 %1103  ;;  %v3585_v9 = vrot.slane %v2954_v35, %v2383_v5 }
 0x2bb   :  { %v1243_v0 = vadd.f32 %v1241_v52, %v1094_v56  ;;  %v1107_v4 = vsel %vm1100_vm2, %v1104_v17, %v1106_v25  ;;  %v1108_v50 = vsel %vm1100_vm2, %v1106_v25, %v1104_v17  ;;  %v1122_v51 = vmul.f32 %v3583_v48, %v1101_v41  ;;  %v3599_v52 = vld [vmem:[#allocation47_spill] sm:$0xff] }
 0x2bc   :  { %v1244_v44 = vadd.f32 %v1242_v49, %v1095_v57  ;;  %v1123_v45 = vmul.f32 %v3584_v40, %v1102_v62  ;;  %v1137_v11 = vmul.f32 %v3585_v9, %v1107_v4  ;;  %v3586_v55 = vrot.slane %v2954_v35, %v2386_v22  ;;  %v3601_v9 = vld [vmem:[#allocation17_spill] sm:$0xff] }
 0x2bd   :  { %v3589_v16 = vrot.slane %v3588_v3, %v2383_v5  ;;  %v3591_v26 = vrot.slane %v3588_v3, %v2386_v22  ;;  %v1379_v43 = vadd.f32 %v1377_v39, %v1243_v0  ;;  %v954_v15 = vadd.f32 %v3592_v6, %v2974_v18  ;;  %v3600_v0 = vld [vmem:[#allocation29_spill] sm:$0xff] }
 0x2be   :  { %v1138_v19 = vmul.f32 %v3586_v55, %v1108_v50  ;;  %v1380_v2 = vadd.f32 %v1378_v30, %v1244_v44  ;;  %v953_v34 = vadd.f32 %v3593_v7, %v2971_v10  ;;  %v1139_v35 = vadd.f32 %v1137_v11, %v1122_v51  ;;  %v3602_v55 = vld [vmem:[#allocation15_spill] sm:$0xff] }
 0x2bf   :  { %v1394_v8 = vmul.f32 %v3589_v16, %v3587_v36  ;;  %v1395_v61 = vmul.f32 %v3591_v26, %v3590_v58  ;;  %v3596_v42 = vrot.slane %v3595_v60, %v2383_v5  ;;  %v3598_v63 = vrot.slane %v3595_v60, %v2386_v22  ;;  %v3603_v36 = vld [vmem:[#allocation18_spill] sm:$0xff]  ;;  %v3604_v58 = vld [vmem:[#allocation16_spill] sm:$0xff] }
 0x2c0   :  { %v1140_v13 = vadd.f32 %v1138_v19, %v1123_v45  ;;  %v1275_v37 = vadd.f32 %v3048_v29, %v1258_v21  ;;  %v1276_v49 = vadd.f32 %v3599_v52, %v1259_v24  ;;  %v1141_v18 = vadd.f32 %v1139_v35, %v953_v34  ;;  %v3606_v34 = vld [vmem:[#allocation19_spill] sm:$0xff]  ;;  %v1531_v52 = vld [vmem:[#allocation8 + $0x18] sm:$0xff] }
 0x2c1   :  { %v1409_v32 = vmul.f32 %v3596_v42, %v3594_v38  ;;  %v1410_v12 = vmul.f32 %v3598_v63, %v3597_v33  ;;  %v1907_v20 = vmov 1966171168   ;;  %v3608_v42 = vld [vmem:[#allocation20_spill] sm:$0xff] }
 0x2c2   :  { %v1142_v23 = vadd.f32 %v1140_v13, %v954_v15  ;;  %v1277_v39 = vadd.f32 %v1275_v37, %v1141_v18  ;;  %v1471_v24 = vunpack.c.l.s4 %v1907_v20  ;;  %v3605_v15 = vld [vmem:[#allocation21_spill] sm:$0xff]  ;;  %v1529_v18 = vld [vmem:[#allocation8 + $0x8] sm:$0xff] }
 0x2c3   :  { %v1411_v27 = vadd.f32 %v1409_v32, %v1394_v8  ;;  %v1412_v10 = vadd.f32 %v1410_v12, %v1395_v61  ;;  %v1530_v37 = vld [vmem:[#allocation8 + $0x10] sm:$0xff] }
 0x2c4   :  { %v1278_v30 = vadd.f32 %v1276_v49, %v1142_v23  ;;  %v1472_v25 = vunpack.c.0.s8 %v1471_v24  ;;  %v1528_v49 = vld [vmem:[#allocation8] sm:$0xff]  ;;  %v1567_v23 = vld [vmem:[#allocation8 + $0x30] sm:$0xff] }
 0x2c5   :  { %v1413_v59 = vadd.f32 %v1411_v27, %v1277_v39  ;;  %v1586_v27 = vld [vmem:[#allocation8 + $0x40] sm:$0xff] }
 0x2c6   :  { %v1414_v28 = vadd.f32 %v1412_v10, %v1278_v30  ;;  %v1475_v44 = vsub.s32 %v1472_v25, %v3600_v0  ;;  %v1568_v10 = vld [vmem:[#allocation8 + $0x38] sm:$0xff]  ;;  %v1565_v39 = vld [vmem:[#allocation8 + $0x20] sm:$0xff]  ;;  %v1566_v30 = vld [vmem:[#allocation8 + $0x28] sm:$0xff] }
 0x2c7   :  { %v1449_v56 = vadd.f32 %v1413_v59, %v1379_v43 }
 0x2c8   :  { %v1450_v57 = vadd.f32 %v1414_v28, %v1380_v2 }
 0x2c9   :  { %v1453_v41 = vadd.f32 %v1451_v54, %v1449_v56 }
 0x2ca   :  { %v1454_v62 = vadd.f32 %v1452_v1, %v1450_v57 }
 0x2cb   :  { %v1711_v46 = vmul.f32 -1.442695, %v1453_v41 }
 0x2cc   :  { %v1712_v53 = vmul.f32 -1.442695, %v1454_v62 }
 0x2cd   :  { %1757 = vpow2.f32 %v1711_v46  ;;  %v1587_v46 = vld [vmem:[#allocation8 + $0x48] sm:$0xff] }
 0x2ce   :  { %1759 = vpow2.f32 %v1712_v53  ;;  %v1588_v53 = vld [vmem:[#allocation8 + $0x50] sm:$0xff] }
 0x2d7   :  { %v1758_v47 = vpop.eup %1757 }
 0x2d8   :  { %v1760_v29 = vpop.eup %1759  ;;  %v1461_v21 = vadd.f32 1.0, %v1758_v47  ;;  %v1589_v47 = vld [vmem:[#allocation8 + $0x58] sm:$0xff] }
 0x2d9   :  { %v1462_v31 = vadd.f32 1.0, %v1760_v29 }
 0x2da   :  { %1761 = vrcp.f32 %v1461_v21 }
 0x2db   :  { %1763 = vrcp.f32 %v1462_v31 }
 0x2e4   :  { %v1762_v17 = vpop.eup %1761 }
 0x2e5   :  { %v1764_v4 = vpop.eup %1763 }
 0x2e6   :  { %v1469_v50 = vcombine.low %v1762_v17, %v1764_v4 }
 0x2e8   :  { %v1476_v54 = vrot.slane %v1469_v50, %v1475_v44 }
 0x2ea   :  { %v1484_v1 = vrot.slane %v1476_v54, %v1475_v44  ;;  %v1477_v48 = vcombine.high %v1476_v54, %v1476_v54 }
 0x2ec   :  { %v1495_v51 = vrot.slane %v1484_v1, %v2383_v5  ;;  %v1499_v40 = vrot.slane %v1484_v1, %v2386_v22  ;;  %v1491_v45 = vrot.slane %v1477_v48, %v1475_v44 }
 0x2ee   :  { %v1514_v11 = vmul.f32 %v1495_v51, %v3601_v9  ;;  %v1512_v19 = vmul.f32 %v1495_v51, %v3602_v55  ;;  %v1515_v3 = vmul.f32 %v1499_v40, %v3603_v36  ;;  %v1513_v26 = vmul.f32 %v1499_v40, %v3604_v58 }
 0x2ef   :  { %v1503_v61 = vrot.slane %v1491_v45, %v2383_v5  ;;  %v1507_v43 = vrot.slane %v1491_v45, %v2386_v22  ;;  %v3607_v5 = vld [vmem:[#allocation22_spill] sm:$0xff] }
 0x2f0   :  { %v1522_v16 = vmax.f32 %v1514_v11, 0.0  ;;  %v1520_v8 = vmax.f32 %v1512_v19, 0.0  ;;  %v1523_v2 = vmax.f32 %v1515_v3, 0.0  ;;  %v1521_v6 = vmax.f32 %v1513_v26, 0.0 }
 0x2f1   :  { %v1518_v7 = vmul.f32 %v1503_v61, %v3605_v15  ;;  %v1516_v35 = vmul.f32 %v1503_v61, %v3606_v34  ;;  %v1519_v60 = vmul.f32 %v1507_v43, %v3607_v5  ;;  %v1517_v32 = vmul.f32 %v1507_v43, %v3608_v42 }
 0x2f2   :  { %1542 = vrot.lane.b32.xlu0 %v1522_v16, %s1893_s30  ;;  %1540 = vrot.lane.b32.xlu1 %v1520_v8, %s1893_s30  ;;  %v1535_v59 = vmul.f32 %v1531_v52, %v1523_v2  ;;  %v1534_v56 = vmul.f32 %v1530_v37, %v1522_v16  ;;  %v1533_v57 = vmul.f32 %v1529_v18, %v1521_v6 }
 0x2f3   :  { %v3264_v13 = vmax.f32 %v1518_v7, 0.0  ;;  %v3266_v38 = vmax.f32 %v1516_v35, 0.0  ;;  %v3274_v22 = vmax.f32 %v1519_v60, 0.0  ;;  %v1525_v33 = vmax.f32 %v1517_v32, 0.0 }
 0x2f4   :  { %v1532_v62 = vmul.f32 %v1528_v49, %v1520_v8  ;;  %v1592_v44 = vmul.f32 %v1588_v53, %v1523_v2  ;;  %v1590_v4 = vmul.f32 %v1586_v27, %v1521_v6  ;;  %v1593_v50 = vmul.f32 %v1589_v47, %v1522_v16 }
 0x2f5   :  { %v1591_v54 = vmul.f32 %v1587_v46, %v1520_v8  ;;  %v1539_v3 = vmul.f32 %v1531_v52, %v3274_v22  ;;  %v1538_v58 = vmul.f32 %v1530_v37, %v3264_v13  ;;  %v1537_v26 = vmul.f32 %v1529_v18, %v1525_v33 }
 0x2f6   :  { %1550 = vrot.lane.b32.xlu0 %v1523_v2, %s1893_s30  ;;  %1548 = vrot.lane.b32.xlu1 %v1521_v6, %s1893_s30  ;;  %v1594_v16 = vmul.f32 %v1586_v27, %v1525_v33  ;;  %v1536_v43 = vmul.f32 %v1528_v49, %v3266_v38  ;;  %v1597_v37 = vmul.f32 %v1589_v47, %v3264_v13  ;;  %v1655_v47 = vld [vmem:[#allocation8 + $0x98] sm:$0xff] }
 0x2fa   :  { %1546 = vrot.lane.b32.xlu0 %v3264_v13, %s1893_s30  ;;  %1544 = vrot.lane.b32.xlu1 %v3266_v38, %s1893_s30 }
 0x2fe   :  { %1554 = vrot.lane.b32.xlu0 %v3274_v22, %s1893_s30  ;;  %1552 = vrot.lane.b32.xlu1 %v1525_v33, %s1893_s30  ;;  %v1595_v33 = vmul.f32 %v1587_v46, %v3266_v38  ;;  %v1615_v46 = vld [vmem:[#allocation8 + $0x60] sm:$0xff] }
 0x364   :  { %v1543_v63 = vpop.permute.xlu0 %1542  ;;  %v1541_v12 = vpop.permute.xlu1 %1540 }
 0x368   :  { %v1551_v28 = vpop.permute.xlu0 %1550  ;;  %v1549_v41 = vpop.permute.xlu1 %1548 }
 0x369   :  { %v1557_v29 = vsel %vm502_vm5, %v1543_v63, %v1551_v28  ;;  %v1561_v21 = vsel %vm502_vm5, %v1551_v28, %v1543_v63  ;;  %v1556_v31 = vsel %vm502_vm5, %v1541_v12, %v1549_v41  ;;  %v1560_v20 = vsel %vm502_vm5, %v1549_v41, %v1541_v12  ;;  %v1617_v41 = vld [vmem:[#allocation8 + $0x70] sm:$0xff] }
 0x36a   :  { %v1571_v24 = vmul.f32 %v1567_v23, %v1557_v29  ;;  %v1572_v25 = vmul.f32 %v1568_v10, %v1561_v21  ;;  %v1569_v17 = vmul.f32 %v1565_v39, %v1556_v31  ;;  %v1570_v0 = vmul.f32 %v1566_v30, %v1560_v20  ;;  %v1616_v29 = vld [vmem:[#allocation8 + $0x68] sm:$0xff]  ;;  %v1652_v31 = vld [vmem:[#allocation8 + $0x80] sm:$0xff] }
 0x36b   :  { %v1596_v12 = vmul.f32 %v1588_v53, %v3274_v22  ;;  %v1654_v53 = vld [vmem:[#allocation8 + $0x90] sm:$0xff]  ;;  %v1653_v20 = vld [vmem:[#allocation8 + $0x88] sm:$0xff] }
 0x36c   :  { %v1579_v1 = vadd.f32 %v1571_v24, %v1534_v56  ;;  %v1580_v48 = vadd.f32 %v1572_v25, %v1535_v59  ;;  %v1577_v51 = vadd.f32 %v1569_v17, %v1532_v62  ;;  %v1578_v40 = vadd.f32 %v1570_v0, %v1533_v57  ;;  %v1547_v45 = vpop.permute.xlu0 %1546  ;;  %v1545_v9 = vpop.permute.xlu1 %1544  ;;  %v1618_v62 = vld [vmem:[#allocation8 + $0x78] sm:$0xff] }
 0x36e   :  { %v1600_v11 = vadd.f32 %v1592_v44, %v1579_v1  ;;  %v3287_v55 = vadd.f32 %v1590_v4, %v1577_v51  ;;  %v1601_v19 = vadd.f32 %v1593_v50, %v1580_v48  ;;  %v3289_v36 = vadd.f32 %v1591_v54, %v1578_v40 }
 0x370   :  { %v1555_v61 = vpop.permute.xlu0 %1554  ;;  %v1553_v8 = vpop.permute.xlu1 %1552  ;;  %v1608_v2 = vmax.f32 %v1600_v11, 0.0  ;;  %v1606_v6 = vmax.f32 %v3287_v55, 0.0  ;;  %v1609_v63 = vmax.f32 %v1601_v19, 0.0 }
 0x371   :  { %v1559_v15 = vsel %vm502_vm5, %v1547_v45, %v1555_v61  ;;  %v1563_v7 = vsel %vm502_vm5, %v1555_v61, %v1547_v45  ;;  %v1558_v34 = vsel %vm502_vm5, %v1545_v9, %v1553_v8  ;;  %v1562_v35 = vsel %vm502_vm5, %v1553_v8, %v1545_v9 }
 0x372   :  { %v1575_v5 = vmul.f32 %v1567_v23, %v1559_v15  ;;  %v1576_v60 = vmul.f32 %v1568_v10, %v1563_v7  ;;  %v1573_v42 = vmul.f32 %v1565_v39, %v1558_v34  ;;  %v1574_v32 = vmul.f32 %v1566_v30, %v1562_v35  ;;  %1629 = vrot.lane.b32.xlu0 %v1608_v2, %s1893_s30 }
 0x373   :  { %1627 = vrot.lane.b32.xlu1 %v1606_v6, %s1893_s30  ;;  %v1607_v23 = vmax.f32 %v3289_v36, 0.0  ;;  %v1621_v24 = vmul.f32 %v1617_v41, %v1608_v2  ;;  %v1622_v25 = vmul.f32 %v1618_v62, %v1609_v63  ;;  %v1619_v48 = vmul.f32 %v1615_v46, %v1606_v6 }
 0x374   :  { %v1583_v52 = vadd.f32 %v1575_v5, %v1538_v58  ;;  %v1584_v49 = vadd.f32 %v1576_v60, %v1539_v3  ;;  %v1581_v18 = vadd.f32 %v1573_v42, %v1536_v43  ;;  %v1582_v27 = vadd.f32 %v1574_v32, %v1537_v26 }
 0x375   :  { %v1620_v51 = vmul.f32 %v1616_v29, %v1607_v23 }
 0x376   :  { %v3309_v10 = vadd.f32 %v1594_v16, %v1581_v18  ;;  %v1603_v39 = vadd.f32 %v1595_v33, %v1582_v27  ;;  %1637 = vrot.lane.b32.xlu0 %v1609_v63, %s1893_s30  ;;  %v1604_v30 = vadd.f32 %v1596_v12, %v1583_v52  ;;  %v1605_v38 = vadd.f32 %v1597_v37, %v1584_v49 }
 0x377   :  { %1635 = vrot.lane.b32.xlu1 %v1607_v23, %s1893_s30 }
 0x378   :  { %v1610_v59 = vmax.f32 %v3309_v10, 0.0  ;;  %v1612_v22 = vmax.f32 %v1604_v30, 0.0  ;;  %v1613_v13 = vmax.f32 %v1605_v38, 0.0  ;;  %v1611_v28 = vmax.f32 %v1603_v39, 0.0 }
 0x37a   :  { %1633 = vrot.lane.b32.xlu0 %v1612_v22, %s1893_s30  ;;  %v1625_v43 = vmul.f32 %v1617_v41, %v1612_v22  ;;  %v1626_v2 = vmul.f32 %v1618_v62, %v1613_v13  ;;  %v1624_v42 = vmul.f32 %v1616_v29, %v1611_v28  ;;  %v1623_v32 = vmul.f32 %v1615_v46, %v1610_v59 }
 0x37b   :  { %1631 = vrot.lane.b32.xlu1 %v1610_v59, %s1893_s30 }
 0x37e   :  { %1641 = vrot.lane.b32.xlu0 %v1613_v13, %s1893_s30 }
 0x37f   :  { %1639 = vrot.lane.b32.xlu1 %v1611_v28, %s1893_s30 }
 0x3e4   :  { %v1630_v56 = vpop.permute.xlu0 %1629 }
 0x3e5   :  { %v1628_v57 = vpop.permute.xlu1 %1627 }
 0x3e8   :  { %v1638_v21 = vpop.permute.xlu0 %1637 }
 0x3e9   :  { %v1644_v17 = vsel %vm502_vm5, %v1630_v56, %v1638_v21  ;;  %v1648_v0 = vsel %vm502_vm5, %v1638_v21, %v1630_v56  ;;  %v1636_v44 = vpop.permute.xlu1 %1635 }
 0x3ea   :  { %v1658_v4 = vmul.f32 %v1654_v53, %v1644_v17  ;;  %v1659_v50 = vmul.f32 %v1655_v47, %v1648_v0  ;;  %v1643_v54 = vsel %vm502_vm5, %v1628_v57, %v1636_v44  ;;  %v1647_v1 = vsel %vm502_vm5, %v1636_v44, %v1628_v57 }
 0x3eb   :  { %v1656_v40 = vmul.f32 %v1652_v31, %v1643_v54  ;;  %v1657_v45 = vmul.f32 %v1653_v20, %v1647_v1 }
 0x3ec   :  { %v1666_v9 = vadd.f32 %v1658_v4, %v1621_v24  ;;  %v1667_v11 = vadd.f32 %v1659_v50, %v1622_v25  ;;  %v1634_v55 = vpop.permute.xlu0 %1633 }
 0x3ed   :  { %v1664_v19 = vadd.f32 %v1656_v40, %v1619_v48  ;;  %v1665_v36 = vadd.f32 %v1657_v45, %v1620_v51  ;;  %v1632_v3 = vpop.permute.xlu1 %1631 }
 0x3ee   :  { %v1674_v58 = vmax.f32 %v1666_v9, 0.0  ;;  %v1675_v26 = vmax.f32 %v1667_v11, 0.0 }
 0x3ef   :  { %v1672_v61 = vmax.f32 %v1664_v19, 0.0  ;;  %v1673_v16 = vmax.f32 %v1665_v36, 0.0 }
 0x3f0   :  { %1682 = vst [vmem:[#allocation10 + $0x10] sm:$0xff] %v1674_v58  ;;  %1683 = vst [vmem:[#allocation10 + $0x18] sm:$0xff] %v1675_v26  ;;  %v1642_v8 = vpop.permute.xlu0 %1641 }
 0x3f1   :  { %1680 = vst [vmem:[#allocation10] sm:$0xff] %v1672_v61  ;;  %1681 = vst [vmem:[#allocation10 + $0x8] sm:$0xff] %v1673_v16  ;;  %v1646_v6 = vsel %vm502_vm5, %v1634_v55, %v1642_v8  ;;  %v1650_v15 = vsel %vm502_vm5, %v1642_v8, %v1634_v55  ;;  %v1640_v7 = vpop.permute.xlu1 %1639 }
 0x3f2   :  { %v1662_v34 = vmul.f32 %v1654_v53, %v1646_v6  ;;  %v1663_v35 = vmul.f32 %v1655_v47, %v1650_v15  ;;  %v1645_v5 = vsel %vm502_vm5, %v1632_v3, %v1640_v7  ;;  %v1649_v60 = vsel %vm502_vm5, %v1640_v7, %v1632_v3 }
 0x3f3   :  { %v1660_v33 = vmul.f32 %v1652_v31, %v1645_v5  ;;  %v1661_v63 = vmul.f32 %v1653_v20, %v1649_v60 }
 0x3f4   :  { %v1670_v12 = vadd.f32 %v1662_v34, %v1625_v43  ;;  %v1671_v37 = vadd.f32 %v1663_v35, %v1626_v2 }
 0x3f5   :  { %v1668_v52 = vadd.f32 %v1660_v33, %v1623_v32  ;;  %v1669_v49 = vadd.f32 %v1661_v63, %v1624_v42 }
 0x3f6   :  { %v1678_v18 = vmax.f32 %v1670_v12, 0.0  ;;  %v1679_v27 = vmax.f32 %v1671_v37, 0.0 }
 0x3f7   :  { %v1676_v23 = vmax.f32 %v1668_v52, 0.0  ;;  %v1677_v10 = vmax.f32 %v1669_v49, 0.0 }
 0x3f8   :  { %1686 = vst [vmem:[#allocation10 + $0x30] sm:$0xff] %v1678_v18  ;;  %1687 = vst [vmem:[#allocation10 + $0x38] sm:$0xff] %v1679_v27 }
 0x3f9   :  { %1684 = vst [vmem:[#allocation10 + $0x20] sm:$0xff] %v1676_v23  ;;  %1685 = vst [vmem:[#allocation10 + $0x28] sm:$0xff] %v1677_v10 }
 0x3fa   :  { %1864 = shalt.err (!%p1861_p8)
}
 0x3fb   :  { %s1865_s22 = scalar_lea.hbm %s3355_s6, 1024 }
 0x3fc   :  { %p1866_p9 = scmp.ne.s32.totalorder %s3355_s6, %s1865_s22  ;;  %p1869_p10 = scmp.lt.u32.totalorder %s1865_s22, %s3355_s6 }
 0x3fe   :  { %p1871_p11 = pnand %p1869_p10, %p1866_p9 }
 0x400   :  { %1874 = shalt.err (!%p1871_p11)
}
 0x401   :  { %1699 = dma.vmem_to_hbm [thread:$0]  %s1694_s4, 1024, %s3355_s6, [#allocation4], %s1885_s9, %s1885_s9, %s1886_s10  }
 0x402   :  { %1881 = dma.done.wait [#allocation4], 1024  }
 0x403   :  { %1882 = vsyncadd [#allocation4], 4294966272 }
 0x404   :  { %1703 = vsyncpa [#allocation3], 1 }
 0x405   :  { %1704 = vsyncpa [#allocation6], 1 }
 0x406   :  { %1705 = vsyncpa [#allocation9], 1 }
 0x407   :  { %1706 = vsyncpa [#allocation4], 1 }

</bundles_post_ra>
